<compile_context>
chip_gen: v6e
topology: v6e:2x2x1
jax: 0.10.0
libtpu: 0.0.40
codegen_flags: <defaults>
</compile_context>

<pallas_src>
import functools
import math

import jax
import jax.numpy as jnp
from jax.experimental import pallas as pl
from jax.experimental.pallas import tpu as pltpu

HID = 64              # hidden width of the original module
MIN_TILE = 128        # smallest batch tile (multiple of 8 sublanes)
MAX_TILE = 1024       # largest batch tile (tiles + activations stay << VMEM)
OUT_COLS = 8          # output slab width: cols 0/1/2 = action, log_prob, entropy
NEG_PAD = -1e30       # bias for padded logit columns: exp -> 0, never argmax


def _round_up(x, m):
    return -(-x // m) * m


def _choose_tile(b):
    """Batch rows per grid step.

    Big tiles amortize the ~0.35us per-grid-step pipeline overhead; the cap and
    the halving keep padding waste bounded for small batches and give >= 2 grid
    steps when b > MIN_TILE so the "parallel" axis can shard across TensorCores.
    """
    t = _round_up(max((b + 1) // 2, 1), MIN_TILE)
    return int(min(t, MAX_TILE))


def _actor_kernel(obs_ref, w1_ref, b1_ref, w2_ref, b2_ref, w3_ref, b3_ref,
                  out_ref):
    # --- MLP hot path (MXU matmuls + VPU relu) ------------------------------
    x = obs_ref[...]                                                # (Bt, inp)
    h1 = jnp.maximum(
        jnp.dot(x, w1_ref[...], preferred_element_type=jnp.float32)
        + b1_ref[...], 0.0)                                         # (Bt, HID_PAD)
    h2 = jnp.maximum(
        jnp.dot(h1, w2_ref[...], preferred_element_type=jnp.float32)
        + b2_ref[...], 0.0)                                         # (Bt, HID_PAD)
    logits = (jnp.dot(h2, w3_ref[...], preferred_element_type=jnp.float32)
              + b3_ref[...])                                        # (Bt, ACT_PAD)
    # Padded action columns carry bias -1e30: exp underflows to exactly 0, so
    # they contribute nothing to softmax / argmax / entropy.

    a_pad = logits.shape[-1]
    m = jnp.max(logits, axis=-1, keepdims=True)                     # (Bt, 1)
    e = jnp.exp(logits - m)                                         # padded -> 0
    z = jnp.sum(e, axis=-1, keepdims=True)                          # (Bt, 1)
    inv_z = pl.reciprocal(z, approx=True)                           # EUP slot
    log_z = jnp.log(z)

    # Deterministic action = first argmax over logits (== argmax over probs).
    # TODO(synk): stochastic branch (pi.sample()) would need Gumbel-max via
    # pltpu.prng_*; only the deterministic=True branch is implemented.
    iota = jax.lax.broadcasted_iota(jnp.int32, logits.shape, 1)
    act = jnp.min(jnp.where(logits == m, iota, a_pad),
                  axis=-1, keepdims=True)                           # (Bt, 1) i32

    # logits[act] == m exactly, so log_prob = m - (m + log z) = -log z.
    logp = -log_z                                                   # (Bt, 1)
    # entropy = logZ - sum(p * logits) = log z - (1/z) * sum(e * (logits - m))
    ent = log_z - inv_z * jnp.sum(e * (logits - m), axis=-1, keepdims=True)

    # Narrow (Bt, 8) output slab, direct sub-slice stores (no iota/where pack).
    out_ref[...] = jnp.zeros_like(out_ref)
    out_ref[:, 0:1] = act.astype(jnp.float32)   # exact: action index < 2^24
    out_ref[:, 1:2] = logp
    out_ref[:, 2:3] = ent


@functools.partial(jax.jit, static_argnames=("tile",))
def _actor_forward_padded(obs_p, w1, b1, w2, b2, w3, b3, *, tile):
    bp, inp = obs_p.shape
    hid_pad = w1.shape[1]
    act_pad = w3.shape[1]
    # Weight/bias index_maps are constant -> blocks stay VMEM-resident across
    # the grid (no re-DMA per step).  pl.Buffered(1) single-buffering skipped:
    # savings are ~200 KiB of VMEM out of >32 MiB and constant blocks are not
    # re-fetched anyway.
    return pl.pallas_call(
        _actor_kernel,
        out_shape=jax.ShapeDtypeStruct((bp, OUT_COLS), jnp.float32),
        grid=(bp // tile,),
        in_specs=[
            pl.BlockSpec((tile, inp), lambda i: (i, 0)),         # obs tile
            pl.BlockSpec((inp, hid_pad), lambda i: (0, 0)),      # W1 (resident)
            pl.BlockSpec((1, hid_pad), lambda i: (0, 0)),        # b1
            pl.BlockSpec((hid_pad, hid_pad), lambda i: (0, 0)),  # W2
            pl.BlockSpec((1, hid_pad), lambda i: (0, 0)),        # b2
            pl.BlockSpec((hid_pad, act_pad), lambda i: (0, 0)),  # W3
            pl.BlockSpec((1, act_pad), lambda i: (0, 0)),        # b3
        ],
        out_specs=pl.BlockSpec((tile, OUT_COLS), lambda i: (i, 0)),
        compiler_params=pltpu.CompilerParams(
            dimension_semantics=("parallel",)),
    )(obs_p, w1, b1, w2, b2, w3, b3)


class ClassicActorPallas:
    """JAX/Pallas re-implementation of ClassicActor (deterministic=True path)."""

    def __init__(self, inp_size, act_size, deterministic=True, key=None):
        assert deterministic, "only the deterministic branch is implemented"
        self.deterministic = deterministic
        self.inp_size = inp_size
        self.act_size = act_size
        self.hid_pad = _round_up(HID, 128)
        self.act_pad = _round_up(act_size, 128)

        if key is None:
            key = jax.random.PRNGKey(0)
        ks = jax.random.split(key, 6)

        def lin_init(kw, kb, fan_in, fan_out):
            bound = 1.0 / math.sqrt(float(fan_in))
            w = jax.random.uniform(kw, (fan_in, fan_out), jnp.float32, -bound, bound)
            b = jax.random.uniform(kb, (1, fan_out), jnp.float32, -bound, bound)
            return w, b

        # Unpadded parameters (kept for reference / inspection).
        self.w1, self.b1 = lin_init(ks[0], ks[1], inp_size, HID)
        self.w2, self.b2 = lin_init(ks[2], ks[3], HID, HID)
        self.w3, self.b3 = lin_init(ks[4], ks[5], HID, act_size)

        def pad2(a, rows, cols, fill=0.0):
            return jnp.pad(a, ((0, rows - a.shape[0]), (0, cols - a.shape[1])),
                           constant_values=fill)

        # Kernel copies: hidden/logit dims lane-padded to 128; the input feature
        # dim is NOT padded (obs keeps its natural width).  Zero padding is
        # inert; padded logit biases are -1e30 so softmax/argmax ignore them.
        # TODO(synk): optional bf16 weight cast for v6e/v7x MXU intentionally
        # skipped (kernel is HBM-bound; f32 keeps module-exact semantics).
        self.w1p = pad2(self.w1, inp_size, self.hid_pad)
        self.b1p = pad2(self.b1, 1, self.hid_pad)
        self.w2p = pad2(self.w2, self.hid_pad, self.hid_pad)
        self.b2p = pad2(self.b2, 1, self.hid_pad)
        self.w3p = pad2(self.w3, self.hid_pad, self.act_pad)
        self.b3p = pad2(self.b3, 1, self.act_pad, fill=NEG_PAD)

    def forward_batched(self, obs):
        """obs: (B, inp_size) -> (action i32 (B,), log_prob (B,), entropy (B,)).

        Returns device arrays; no host sync, so it can live inside a scan/loop.
        """
        obs = jnp.asarray(obs, jnp.float32)
        if obs.ndim == 1:
            obs = obs[None, :]
        b = obs.shape[0]
        tile = _choose_tile(b)
        bp = _round_up(b, tile)
        if bp != b:
            obs = jnp.pad(obs, ((0, bp - b), (0, 0)))   # batch padding only
        out = _actor_forward_padded(obs, self.w1p, self.b1p, self.w2p,
                                    self.b2p, self.w3p, self.b3p, tile=tile)[:b]
        return out[:, 0].astype(jnp.int32), out[:, 1], out[:, 2]

    def __call__(self, obs):
        # torch-module-compatible single-observation path (forces one host
        # transfer for int(); prefer forward_batched in rollout loops).
        act, logp, ent = self.forward_batched(
            jnp.asarray(obs, jnp.float32).reshape(1, -1))
        return int(act[0]), logp[0], ent[0]


def _reference(obs, w1, b1, w2, b2, w3, b3):
    h1 = jnp.maximum(obs @ w1 + b1, 0.0)
    h2 = jnp.maximum(h1 @ w2 + b2, 0.0)
    logits = h2 @ w3 + b3
    logp_all = jax.nn.log_softmax(logits, axis=-1)
    a = jnp.argmax(logits, axis=-1)
    logp = jnp.take_along_axis(logp_all, a[:, None], axis=-1)[:, 0]
    ent = -jnp.sum(jnp.exp(logp_all) * logp_all, axis=-1)
    return a, logp, ent


if __name__ == "__main__":
    inp_size, act_size = 8, 6
    batch = 256   # -> tile 128, two grid steps

    key = jax.random.PRNGKey(0)
    k_param, k_obs = jax.random.split(key)

    actor = ClassicActorPallas(inp_size, act_size, deterministic=True, key=k_param)
    obs = jax.random.normal(k_obs, (batch, inp_size), jnp.float32)

    act, logp, ent = actor.forward_batched(obs)
    jax.block_until_ready((act, logp, ent))

    # Correctness check against a pure-JAX reference using unpadded weights.
    ra, rlogp, rent = _reference(obs, actor.w1, actor.b1, actor.w2, actor.b2,
                                 actor.w3, actor.b3)
    assert bool(jnp.all(act == ra.astype(jnp.int32))), "action mismatch"
    assert float(jnp.max(jnp.abs(logp - rlogp))) < 1e-4, "log_prob mismatch"
    # entropy uses pl.reciprocal(approx=True): allow a slightly looser bound.
    assert float(jnp.max(jnp.abs(ent - rent))) < 5e-3, "entropy mismatch"

    # Single-observation compatibility path (original torch module semantics).
    a0, lp0, en0 = actor(obs[0])
    assert a0 == int(ra[0])
    assert abs(float(lp0) - float(rlogp[0])) < 1e-4
    assert abs(float(en0) - float(rent[0])) < 5e-3

    print("KERNEL_OK")
</pallas_src>

<mosaic_0001>
module attributes {stable_mosaic.version = 11 : i64} {
  func.func @_actor_kernel(%arg0: i32, %arg1: memref<128x8xf32, #tpu.memory_space<vmem>>, %arg2: memref<8x128xf32, #tpu.memory_space<vmem>>, %arg3: memref<1x128xf32, #tpu.memory_space<vmem>>, %arg4: memref<128x128xf32, #tpu.memory_space<vmem>>, %arg5: memref<1x128xf32, #tpu.memory_space<vmem>>, %arg6: memref<128x128xf32, #tpu.memory_space<vmem>>, %arg7: memref<1x128xf32, #tpu.memory_space<vmem>>, %arg8: memref<128x8xf32, #tpu.memory_space<vmem>>) attributes {dimension_semantics = [#tpu.dimension_semantics<parallel>], iteration_bounds = array<i64: 2>, scalar_prefetch = 0 : i64, scratch_operands = 0 : i64, tpu.core_type = #tpu.core_type<tc>, window_params = [{transform_indices = @transform_0, window_bounds = array<i64: 128, 8>}, {pipeline_mode = #tpu.pipeline_mode<synchronous>, transform_indices = @transform_1, window_bounds = array<i64: 8, 128>}, {pipeline_mode = #tpu.pipeline_mode<synchronous>, transform_indices = @transform_2, window_bounds = array<i64: 1, 128>}, {pipeline_mode = #tpu.pipeline_mode<synchronous>, transform_indices = @transform_3, window_bounds = array<i64: 128, 128>}, {pipeline_mode = #tpu.pipeline_mode<synchronous>, transform_indices = @transform_4, window_bounds = array<i64: 1, 128>}, {pipeline_mode = #tpu.pipeline_mode<synchronous>, transform_indices = @transform_5, window_bounds = array<i64: 128, 128>}, {pipeline_mode = #tpu.pipeline_mode<synchronous>, transform_indices = @transform_6, window_bounds = array<i64: 1, 128>}, {transform_indices = @transform_7, window_bounds = array<i64: 128, 8>}]} {
    %c0 = arith.constant 0 : index
    %c0_0 = arith.constant 0 : index
    %0 = vector.load %arg1[%c0, %c0_0] : memref<128x8xf32, #tpu.memory_space<vmem>>, vector<128x8xf32>
    %c0_1 = arith.constant 0 : index
    %c0_2 = arith.constant 0 : index
    %1 = vector.load %arg2[%c0_1, %c0_2] : memref<8x128xf32, #tpu.memory_space<vmem>>, vector<8x128xf32>
    %cst = arith.constant dense<0.000000e+00> : vector<128x128xf32>
    %2 = tpu.matmul %0, %1, %cst {dimension_numbers = #tpu.dot_dimension_numbers<[1], [0], [0], [1], [0, 0, 1, 1], [], []>} : vector<128x8xf32>, vector<8x128xf32>, vector<128x128xf32> -> vector<128x128xf32>
    %c0_3 = arith.constant 0 : index
    %c0_4 = arith.constant 0 : index
    %3 = vector.load %arg3[%c0_3, %c0_4] : memref<1x128xf32, #tpu.memory_space<vmem>>, vector<1x128xf32>
    %4 = vector.broadcast %3 : vector<1x128xf32> to vector<128x128xf32>
    %5 = arith.addf %2, %4 : vector<128x128xf32>
    %cst_5 = arith.constant 0.000000e+00 : f32
    %6 = vector.broadcast %cst_5 : f32 to vector<128x128xf32>
    %7 = arith.maximumf %5, %6 : vector<128x128xf32>
    %c0_6 = arith.constant 0 : index
    %c0_7 = arith.constant 0 : index
    %8 = vector.load %arg4[%c0_6, %c0_7] : memref<128x128xf32, #tpu.memory_space<vmem>>, vector<128x128xf32>
    %cst_8 = arith.constant dense<0.000000e+00> : vector<128x128xf32>
    %9 = tpu.matmul %7, %8, %cst_8 {dimension_numbers = #tpu.dot_dimension_numbers<[1], [0], [0], [1], [0, 0, 1, 1], [], []>} : vector<128x128xf32>, vector<128x128xf32>, vector<128x128xf32> -> vector<128x128xf32>
    %c0_9 = arith.constant 0 : index
    %c0_10 = arith.constant 0 : index
    %10 = vector.load %arg5[%c0_9, %c0_10] : memref<1x128xf32, #tpu.memory_space<vmem>>, vector<1x128xf32>
    %11 = vector.broadcast %10 : vector<1x128xf32> to vector<128x128xf32>
    %12 = arith.addf %9, %11 : vector<128x128xf32>
    %cst_11 = arith.constant 0.000000e+00 : f32
    %13 = vector.broadcast %cst_11 : f32 to vector<128x128xf32>
    %14 = arith.maximumf %12, %13 : vector<128x128xf32>
    %c0_12 = arith.constant 0 : index
    %c0_13 = arith.constant 0 : index
    %15 = vector.load %arg6[%c0_12, %c0_13] : memref<128x128xf32, #tpu.memory_space<vmem>>, vector<128x128xf32>
    %cst_14 = arith.constant dense<0.000000e+00> : vector<128x128xf32>
    %16 = tpu.matmul %14, %15, %cst_14 {dimension_numbers = #tpu.dot_dimension_numbers<[1], [0], [0], [1], [0, 0, 1, 1], [], []>} : vector<128x128xf32>, vector<128x128xf32>, vector<128x128xf32> -> vector<128x128xf32>
    %c0_15 = arith.constant 0 : index
    %c0_16 = arith.constant 0 : index
    %17 = vector.load %arg7[%c0_15, %c0_16] : memref<1x128xf32, #tpu.memory_space<vmem>>, vector<1x128xf32>
    %18 = vector.broadcast %17 : vector<1x128xf32> to vector<128x128xf32>
    %19 = arith.addf %16, %18 : vector<128x128xf32>
    %cst_17 = arith.constant dense<0xFF800000> : vector<128xf32>
    %20 = vector.multi_reduction <maximumf>, %19, %cst_17 [1] : vector<128x128xf32> to vector<128xf32>
    %21 = vector.shape_cast %20 : vector<128xf32> to vector<128x1xf32>
    %22 = vector.broadcast %21 : vector<128x1xf32> to vector<128x128xf32>
    %23 = arith.subf %19, %22 : vector<128x128xf32>
    %24 = math.exp %23 : vector<128x128xf32>
    %cst_18 = arith.constant dense<0.000000e+00> : vector<128xf32>
    %25 = vector.multi_reduction <add>, %24, %cst_18 [1] : vector<128x128xf32> to vector<128xf32>
    %26 = vector.shape_cast %25 : vector<128xf32> to vector<128x1xf32>
    %27 = tpu.reciprocal %26 {approx = true} : vector<128x1xf32> -> vector<128x1xf32>
    %28 = math.log %26 : vector<128x1xf32>
    %29 = tpu.iota {dimensions = array<i32: 1>} : vector<128x128xi32>
    %30 = vector.broadcast %21 : vector<128x1xf32> to vector<128x128xf32>
    %31 = arith.cmpf oeq, %19, %30 : vector<128x128xf32>
    %c128_i32 = arith.constant 128 : i32
    %32 = vector.broadcast %c128_i32 : i32 to vector<128x128xi32>
    %33 = arith.select %31, %29, %32 : vector<128x128xi1>, vector<128x128xi32>
    %cst_19 = arith.constant dense<2147483647> : vector<128xi32>
    %34 = vector.multi_reduction <minsi>, %33, %cst_19 [1] : vector<128x128xi32> to vector<128xi32>
    %35 = vector.shape_cast %34 : vector<128xi32> to vector<128x1xi32>
    %cst_20 = arith.constant 0.000000e+00 : f32
    %36 = vector.broadcast %cst_20 : f32 to vector<128x1xf32>
    %37 = arith.subf %36, %28 : vector<128x1xf32>
    %38 = vector.broadcast %21 : vector<128x1xf32> to vector<128x128xf32>
    %39 = arith.subf %19, %38 : vector<128x128xf32>
    %40 = arith.mulf %24, %39 : vector<128x128xf32>
    %cst_21 = arith.constant dense<0.000000e+00> : vector<128xf32>
    %41 = vector.multi_reduction <add>, %40, %cst_21 [1] : vector<128x128xf32> to vector<128xf32>
    %42 = vector.shape_cast %41 : vector<128xf32> to vector<128x1xf32>
    %43 = arith.mulf %27, %42 : vector<128x1xf32>
    %44 = arith.subf %28, %43 : vector<128x1xf32>
    %cst_22 = arith.constant 0.000000e+00 : f32
    %45 = vector.broadcast %cst_22 : f32 to vector<128x8xf32>
    %c0_23 = arith.constant 0 : index
    %c0_24 = arith.constant 0 : index
    %46 = vector.load %arg8[%c0_23, %c0_24] : memref<128x8xf32, #tpu.memory_space<vmem>>, vector<128x8xf32>
    tpu.vector_store %arg8[%c0_23, %c0_24], %45 {strides = array<i32>} : memref<128x8xf32, #tpu.memory_space<vmem>>, vector<128x8xf32>,
    %47 = arith.sitofp %35 : vector<128x1xi32> to vector<128x1xf32>
    %c0_25 = arith.constant 0 : index
    %c0_26 = arith.constant 0 : index
    %48 = vector.load %arg8[%c0_25, %c0_26] : memref<128x8xf32, #tpu.memory_space<vmem>>, vector<128x1xf32>
    tpu.vector_store %arg8[%c0_25, %c0_26], %47 {strides = array<i32>} : memref<128x8xf32, #tpu.memory_space<vmem>>, vector<128x1xf32>,
    %c0_27 = arith.constant 0 : index
    %c1 = arith.constant 1 : index
    %49 = vector.load %arg8[%c0_27, %c1] : memref<128x8xf32, #tpu.memory_space<vmem>>, vector<128x1xf32>
    tpu.vector_store %arg8[%c0_27, %c1], %37 {strides = array<i32>} : memref<128x8xf32, #tpu.memory_space<vmem>>, vector<128x1xf32>,
    %c0_28 = arith.constant 0 : index
    %c2 = arith.constant 2 : index
    %50 = vector.load %arg8[%c0_28, %c2] : memref<128x8xf32, #tpu.memory_space<vmem>>, vector<128x1xf32>
    tpu.vector_store %arg8[%c0_28, %c2], %44 {strides = array<i32>} : memref<128x8xf32, #tpu.memory_space<vmem>>, vector<128x1xf32>,
    return
  }
  func.func @transform_0(%arg0: i32) -> (i32, i32) {
    %c0_i32 = arith.constant 0 : i32
    %c0_i32_0 = arith.constant 0 : i32
    return %arg0, %c0_i32 : i32, i32
  }
  func.func @transform_1(%arg0: i32) -> (i32, i32) {
    %c0_i32 = arith.constant 0 : i32
    %c0_i32_0 = arith.constant 0 : i32
    %c0_i32_1 = arith.constant 0 : i32
    return %c0_i32, %c0_i32_0 : i32, i32
  }
  func.func @transform_2(%arg0: i32) -> (i32, i32) {
    %c0_i32 = arith.constant 0 : i32
    %c0_i32_0 = arith.constant 0 : i32
    %c0_i32_1 = arith.constant 0 : i32
    return %c0_i32, %c0_i32_0 : i32, i32
  }
  func.func @transform_3(%arg0: i32) -> (i32, i32) {
    %c0_i32 = arith.constant 0 : i32
    %c0_i32_0 = arith.constant 0 : i32
    %c0_i32_1 = arith.constant 0 : i32
    return %c0_i32, %c0_i32_0 : i32, i32
  }
  func.func @transform_4(%arg0: i32) -> (i32, i32) {
    %c0_i32 = arith.constant 0 : i32
    %c0_i32_0 = arith.constant 0 : i32
    %c0_i32_1 = arith.constant 0 : i32
    return %c0_i32, %c0_i32_0 : i32, i32
  }
  func.func @transform_5(%arg0: i32) -> (i32, i32) {
    %c0_i32 = arith.constant 0 : i32
    %c0_i32_0 = arith.constant 0 : i32
    %c0_i32_1 = arith.constant 0 : i32
    return %c0_i32, %c0_i32_0 : i32, i32
  }
  func.func @transform_6(%arg0: i32) -> (i32, i32) {
    %c0_i32 = arith.constant 0 : i32
    %c0_i32_0 = arith.constant 0 : i32
    %c0_i32_1 = arith.constant 0 : i32
    return %c0_i32, %c0_i32_0 : i32, i32
  }
  func.func @transform_7(%arg0: i32) -> (i32, i32) {
    %c0_i32 = arith.constant 0 : i32
    %c0_i32_0 = arith.constant 0 : i32
    return %arg0, %c0_i32 : i32, i32
  }
}

</mosaic_0001>

<bundles_post_ra>
// kernel: _actor_forward_padded.1
= control target key start
LH: loop header
LB: loop body
LE: loop exit
PB: predicated region body
PF: predicated region fallthrough
CT: control target
= control target key end

     0   :  { %s1924_s24 = smov 0   ;;  %s2667_s0 = inlined_call_operand.vmem [shape: f32[256,8], index: 0, kind: input, shape index: {}]   ;;  %s2668_s1 = inlined_call_operand.vmem [shape: f32[8,128], index: 1, kind: input, shape index: {}]   ;;  %s2669_s2 = inlined_call_operand.vmem [shape: f32[1,128], index: 2, kind: input, shape index: {}]   ;;  %s2670_s3 = inlined_call_operand.vmem [shape: f32[128,128], index: 3, kind: input, shape index: {}]   ;;  %s2671_s4 = inlined_call_operand.vmem [shape: f32[1,128], index: 4, kind: input, shape index: {}]   ;;  %s2672_s5 = inlined_call_operand.vmem [shape: f32[128,128], index: 5, kind: input, shape index: {}]   ;;  %s2673_s6 = inlined_call_operand.vmem [shape: f32[1,128], index: 6, kind: input, shape index: {}]   ;;  %s2674_s7 = inlined_call_operand.vmem [shape: f32[256,8], index: 7, kind: output, shape index: {}]  }
   0x1 LB: > { %s1521_s25 = sadd.s32 4294967295, %s1881_s24   ;;  %p1525_p0 = scmp.ge.s32.totalorder %s1881_s24, 1  ;;  %s1881_s24 = sphi %s1924_s24, %s17_s24  }
   0x2   : > { %p238_p1 = scmp.lt.s32.totalorder %s1881_s24, 3 }
   0x4   : > { %p239_p2 = pnand %p1525_p0, %p238_p1 }
   0x6   : > { %242 = sbr.rel (%p239_p2) target bundleno = 1098 (0x44a), region = 48 }
   0xb   : > { %v298_v0 = vld [vmem:[%s2668_s1] sm:$0xff]  ;;  %s1526_s28 = sshll.u32 %s1521_s25, 4  ;;  %v531_v1 = vld [vmem:[%s2670_s3 + $0x78] sm:$0xff]  ;;  %v530_v2 = vld [vmem:[%s2670_s3 + $0x70] sm:$0xff]  ;;  %vm306_vm0 = vcmask 64512  }
   0xc   : > { %1632 = vmatprep.subr.mxu0 %v298_v0  ;;  %p271_p3 = scmp.lt.s32.totalorder %s1526_s28, 31  ;;  %1658 = vmatprep.subr.mxu1 %v531_v1  ;;  %v529_v3 = vld [vmem:[%s2670_s3 + $0x68] sm:$0xff]  ;;  %v528_v4 = vld [vmem:[%s2670_s3 + $0x60] sm:$0xff]  ;;  %v527_v5 = vld [vmem:[%s2670_s3 + $0x58] sm:$0xff] }
   0xd   : > { %1633 = vmatpush3.msra.mxu0 %v298_v0  ;;  %1659 = vmatpush3.msra.mxu1 %v531_v1  ;;  %v526_v9 = vld [vmem:[%s2670_s3 + $0x50] sm:$0xff]  ;;  %v525_v11 = vld [vmem:[%s2670_s3 + $0x48] sm:$0xff]  ;;  %v524_v13 = vld [vmem:[%s2670_s3 + $0x40] sm:$0xff] }
   0xe   : > { %s2683_s28 = smov (!%p271_p3, %s1526_s28), 31  ;;  %1660 = vmatprep.subr.mxu1 %v530_v2  ;;  %v523_v15 = vld [vmem:[%s2670_s3 + $0x38] sm:$0xff]  ;;  %v522_v17 = vld [vmem:[%s2670_s3 + $0x30] sm:$0xff]  ;;  %v521_v19 = vld [vmem:[%s2670_s3 + $0x28] sm:$0xff] }
   0xf   : > { %1661 = vmatpush3.msra.mxu1 %v530_v2  ;;  %s1527_s14 = sshll.u32 %s2683_s28, 3  ;;  %v520_v21 = vld [vmem:[%s2670_s3 + $0x20] sm:$0xff]  ;;  %v519_v29 = vld [vmem:[%s2670_s3 + $0x18] sm:$0xff]  ;;  %v518_v30 = vld [vmem:[%s2670_s3 + $0x10] sm:$0xff] }
  0x10   : > { %1662 = vmatprep.subr.mxu1 %v529_v3  ;;  %s1955_s17 = scalar_lea.vmem %s2667_s0, %s1527_s14  ;;  %v517_v31 = vld [vmem:[%s2670_s3 + $0x8] sm:$0xff]  ;;  %v516_v32 = vld [vmem:[%s2670_s3] sm:$0xff]  ;;  %v715_v33 = vld [vmem:[%s2672_s5 + $0x78] sm:$0xff]  ;;  %s2343_s22 = scalar_lea.vmem %s2674_s7, %s1527_s14 }
  0x11   : > { %1663 = vmatpush3.msra.mxu1 %v529_v3  ;;  %v282_v6 = vld [vmem:[%s1955_s17] sm:$0xff]  ;;  %v283_v7 = vld [vmem:[%s1955_s17 + $0x8] sm:$0xff]  ;;  %v284_v8 = vld [vmem:[%s1955_s17 + $0x10] sm:$0xff]  ;;  %1714 = vmatprep.subr.mxu0 %v715_v33 }
  0x12   : > { %1664 = vmatprep.subr.mxu1 %v528_v4  ;;  %1634 = vmatprep.mubr.msk.f32.mxu0 %vm306_vm0, %v282_v6  ;;  %v285_v10 = vld [vmem:[%s1955_s17 + $0x18] sm:$0xff]  ;;  %v286_v12 = vld [vmem:[%s1955_s17 + $0x20] sm:$0xff]  ;;  %v287_v14 = vld [vmem:[%s1955_s17 + $0x28] sm:$0xff] }
  0x13   : > { %1665 = vmatpush3.msra.mxu1 %v528_v4  ;;  %1635 = vmatmul.mubr.msk.f32.vlgmr.msra.gmra.mxu0 %vm306_vm0, %v283_v7  ;;  %v288_v16 = vld [vmem:[%s1955_s17 + $0x30] sm:$0xff]  ;;  %v289_v18 = vld [vmem:[%s1955_s17 + $0x38] sm:$0xff]  ;;  %v290_v20 = vld [vmem:[%s1955_s17 + $0x40] sm:$0xff] }
  0x14   : > { %1666 = vmatprep.subr.mxu1 %v527_v5  ;;  %1637 = vmatprep.mubr.msk.f32.mxu0 %vm306_vm0, %v284_v8  ;;  %v291_v22 = vld [vmem:[%s1955_s17 + $0x48] sm:$0xff]  ;;  %v292_v23 = vld [vmem:[%s1955_s17 + $0x50] sm:$0xff]  ;;  %v293_v24 = vld [vmem:[%s1955_s17 + $0x58] sm:$0xff] }
  0x15   : > { %1667 = vmatpush3.msra.mxu1 %v527_v5  ;;  %v294_v25 = vld [vmem:[%s1955_s17 + $0x60] sm:$0xff]  ;;  %v295_v26 = vld [vmem:[%s1955_s17 + $0x68] sm:$0xff]  ;;  %v296_v27 = vld [vmem:[%s1955_s17 + $0x70] sm:$0xff]  ;;  %1715 = vmatpush3.msra.mxu0 %v715_v33 }
  0x16   : > { %1668 = vmatprep.subr.mxu1 %v526_v9  ;;  %v297_v28 = vld [vmem:[%s1955_s17 + $0x78] sm:$0xff]  ;;  %v714_v34 = vld [vmem:[%s2672_s5 + $0x70] sm:$0xff]  ;;  %v713_v35 = vld [vmem:[%s2672_s5 + $0x68] sm:$0xff] }
  0x17   : > { %1669 = vmatpush3.msra.mxu1 %v526_v9  ;;  %1638 = vmatmul.mubr.msk.f32.gmra.mxu0 %vm306_vm0, %v285_v10  ;;  %v712_v36 = vld [vmem:[%s2672_s5 + $0x60] sm:$0xff]  ;;  %v711_v37 = vld [vmem:[%s2672_s5 + $0x58] sm:$0xff]  ;;  %v710_v38 = vld [vmem:[%s2672_s5 + $0x50] sm:$0xff] }
  0x18   : > { %1670 = vmatprep.subr.mxu1 %v525_v11  ;;  %1640 = vmatprep.mubr.msk.f32.mxu0 %vm306_vm0, %v286_v12  ;;  %v709_v39 = vld [vmem:[%s2672_s5 + $0x48] sm:$0xff]  ;;  %v708_v40 = vld [vmem:[%s2672_s5 + $0x40] sm:$0xff]  ;;  %v707_v41 = vld [vmem:[%s2672_s5 + $0x38] sm:$0xff] }
  0x19   : > { %1671 = vmatpush3.msra.mxu1 %v525_v11  ;;  %1716 = vmatprep.subr.mxu0 %v714_v34  ;;  %v706_v42 = vld [vmem:[%s2672_s5 + $0x30] sm:$0xff]  ;;  %v705_v43 = vld [vmem:[%s2672_s5 + $0x28] sm:$0xff]  ;;  %v704_v44 = vld [vmem:[%s2672_s5 + $0x20] sm:$0xff] }
  0x1a   : > { %1672 = vmatprep.subr.mxu1 %v524_v13  ;;  %1717 = vmatpush3.msra.mxu0 %v714_v34  ;;  %v703_v45 = vld [vmem:[%s2672_s5 + $0x18] sm:$0xff]  ;;  %v1530_v46 = vld [vmem:[%s2669_s2] ss:$0 sm:$0xff] }
  0x1b   : > { %1673 = vmatpush3.msra.mxu1 %v524_v13  ;;  %1641 = vmatmul.mubr.msk.f32.gmra.mxu0 %vm306_vm0, %v287_v14  ;;  %v700_v33 = vld [vmem:[%s2672_s5] sm:$0xff] }
  0x1c   : > { %1674 = vmatprep.subr.mxu1 %v523_v15  ;;  %1643 = vmatprep.mubr.msk.f32.mxu0 %vm306_vm0, %v288_v16  ;;  %v1547_v34 = vld [vmem:[%s2671_s4] ss:$0 sm:$0xff] }
  0x1d   : > { %1675 = vmatpush3.msra.mxu1 %v523_v15  ;;  %1718 = vmatprep.subr.mxu0 %v713_v35 }
  0x1e   : > { %1676 = vmatprep.subr.mxu1 %v522_v17  ;;  %1719 = vmatpush3.msra.mxu0 %v713_v35 }
  0x1f   : > { %1677 = vmatpush3.msra.mxu1 %v522_v17  ;;  %1644 = vmatmul.mubr.msk.f32.gmra.mxu0 %vm306_vm0, %v289_v18 }
  0x20   : > { %1678 = vmatprep.subr.mxu1 %v521_v19  ;;  %1646 = vmatprep.mubr.msk.f32.mxu0 %vm306_vm0, %v290_v20 }
  0x21   : > { %1679 = vmatpush3.msra.mxu1 %v521_v19  ;;  %1720 = vmatprep.subr.mxu0 %v712_v36 }
  0x22   : > { %1680 = vmatprep.subr.mxu1 %v520_v21  ;;  %1721 = vmatpush3.msra.mxu0 %v712_v36 }
  0x23   : > { %1681 = vmatpush3.msra.mxu1 %v520_v21  ;;  %1647 = vmatmul.mubr.msk.f32.gmra.mxu0 %vm306_vm0, %v291_v22 }
  0x24   : > { %1649 = vmatprep.mubr.msk.f32.mxu0 %vm306_vm0, %v292_v23  ;;  %1682 = vmatprep.subr.mxu1 %v519_v29 }
  0x25   : > { %1683 = vmatpush3.msra.mxu1 %v519_v29  ;;  %1722 = vmatprep.subr.mxu0 %v711_v37 }
  0x26   : > { %1684 = vmatprep.subr.mxu1 %v518_v30  ;;  %1723 = vmatpush3.msra.mxu0 %v711_v37 }
  0x27   : > { %1650 = vmatmul.mubr.msk.f32.gmra.mxu0 %vm306_vm0, %v293_v24  ;;  %1685 = vmatpush3.msra.mxu1 %v518_v30 }
  0x28   : > { %1652 = vmatprep.mubr.msk.f32.mxu0 %vm306_vm0, %v294_v25  ;;  %1686 = vmatprep.subr.mxu1 %v517_v31 }
  0x29   : > { %1687 = vmatpush3.msra.mxu1 %v517_v31  ;;  %1724 = vmatprep.subr.mxu0 %v710_v38  ;;  %v702_v31 = vld [vmem:[%s2672_s5 + $0x10] sm:$0xff] }
  0x2a   : > { %1688 = vmatprep.subr.mxu1 %v516_v32  ;;  %1725 = vmatpush3.msra.mxu0 %v710_v38 }
  0x2b   : > { %1653 = vmatmul.mubr.msk.f32.gmra.mxu0 %vm306_vm0, %v295_v26  ;;  %1689 = vmatpush3.msra.mxu1 %v516_v32  ;;  %v701_v32 = vld [vmem:[%s2672_s5 + $0x8] sm:$0xff] }
  0x2c   : > { %1655 = vmatprep.mubr.msk.f32.mxu0 %vm306_vm0, %v296_v27  ;;  %1726 = vmatprep.subr.mxu0 %v709_v39 }
  0x2d   : > { %1727 = vmatpush3.msra.mxu0 %v709_v39 }
  0x2e   : > { %1728 = vmatprep.subr.mxu0 %v708_v40 }
  0x2f   : > { %1656 = vmatmul.mubr.msk.f32.gmra.mxu0 %vm306_vm0, %v297_v28 }
  0x30   : > { %1729 = vmatpush3.msra.mxu0 %v708_v40 }
  0x31   : > { %1730 = vmatprep.subr.mxu0 %v707_v41 }
  0x32   : > { %1731 = vmatpush3.msra.mxu0 %v707_v41 }
  0x33   : > { %1732 = vmatprep.subr.mxu0 %v706_v42 }
  0x34   : > { %1733 = vmatpush3.msra.mxu0 %v706_v42 }
  0x35   : > { %1734 = vmatprep.subr.mxu0 %v705_v43 }
  0x36   : > { %1735 = vmatpush3.msra.mxu0 %v705_v43 }
  0x37   : > { %1736 = vmatprep.subr.mxu0 %v704_v44 }
  0x38   : > { %1737 = vmatpush3.msra.mxu0 %v704_v44 }
  0x39   : > { %1738 = vmatprep.subr.mxu0 %v703_v45 }
  0x3a   : > { %1739 = vmatpush3.msra.mxu0 %v703_v45 }
  0x3b   : > { %1740 = vmatprep.subr.mxu0 %v702_v31 }
  0x3c   : > { %1741 = vmatpush3.msra.mxu0 %v702_v31 }
  0x3d   : > { %1742 = vmatprep.subr.mxu0 %v701_v32 }
  0x3e   : > { %1743 = vmatpush3.msra.mxu0 %v701_v32 }
  0x3f   : > { %1744 = vmatprep.subr.mxu0 %v700_v33 }
  0x40   : > { %1745 = vmatpush3.msra.mxu0 %v700_v33 }
  0xd3   : > { %v1636_v47 = vpop.f32.mrf.mxu0 }
  0xd4   : > { %v427_v48 = vadd.f32 %v1636_v47, %v1530_v46 }
  0xd5   : > { %v421_v49 = vpop.f32.mrf.mxu0 }
  0xd6   : > { %v422_v50 = vadd.f32 %v1530_v46, %v421_v49  ;;  %v501_v53 = vmax.f32 %v427_v48, 0.0 }
  0xd7   : > { %v1639_v51 = vpop.f32.mrf.mxu0 }
  0xd8   : > { %v500_v52 = vmax.f32 %v422_v50, 0.0  ;;  %v437_v54 = vadd.f32 %v1639_v51, %v1530_v46 }
  0xd9   : > { %v431_v55 = vpop.f32.mrf.mxu0 }
  0xda   : > { %v432_v56 = vadd.f32 %v1530_v46, %v431_v55  ;;  %1690 = vmatprep.mubr.f32.mxu1 %v500_v52  ;;  %v503_v60 = vmax.f32 %v437_v54, 0.0 }
  0xdb   : > { %v1642_v57 = vpop.f32.mrf.mxu0  ;;  %1691 = vmatmul.mubr.f32.vlgmr.msra.gmra.mxu1 %v501_v53 }
  0xdc   : > { %v502_v58 = vmax.f32 %v432_v56, 0.0  ;;  %v447_v59 = vadd.f32 %v1642_v57, %v1530_v46 }
  0xdd   : > { %v441_v61 = vpop.f32.mrf.mxu0 }
  0xde   : > { %v442_v62 = vadd.f32 %v1530_v46, %v441_v61  ;;  %1693 = vmatprep.mubr.f32.mxu1 %v502_v58  ;;  %v505_v63 = vmax.f32 %v447_v59, 0.0 }
  0xdf   : > { %v1645_v0 = vpop.f32.mrf.mxu0  ;;  %1694 = vmatmul.mubr.f32.gmra.mxu1 %v503_v60 }
  0xe0   : > { %v504_v1 = vmax.f32 %v442_v62, 0.0  ;;  %v457_v2 = vadd.f32 %v1645_v0, %v1530_v46 }
  0xe1   : > { %v451_v3 = vpop.f32.mrf.mxu0 }
  0xe2   : > { %v452_v4 = vadd.f32 %v1530_v46, %v451_v3  ;;  %1696 = vmatprep.mubr.f32.mxu1 %v504_v1  ;;  %v507_v5 = vmax.f32 %v457_v2, 0.0 }
  0xe3   : > { %v1648_v6 = vpop.f32.mrf.mxu0  ;;  %1697 = vmatmul.mubr.f32.gmra.mxu1 %v505_v63 }
  0xe4   : > { %v506_v7 = vmax.f32 %v452_v4, 0.0  ;;  %v467_v8 = vadd.f32 %v1648_v6, %v1530_v46 }
  0xe5   : > { %v461_v9 = vpop.f32.mrf.mxu0 }
  0xe6   : > { %v462_v10 = vadd.f32 %v1530_v46, %v461_v9  ;;  %1699 = vmatprep.mubr.f32.mxu1 %v506_v7  ;;  %v509_v11 = vmax.f32 %v467_v8, 0.0 }
  0xe7   : > { %v1651_v12 = vpop.f32.mrf.mxu0  ;;  %1700 = vmatmul.mubr.f32.gmra.mxu1 %v507_v5 }
  0xe8   : > { %v508_v13 = vmax.f32 %v462_v10, 0.0  ;;  %v477_v14 = vadd.f32 %v1651_v12, %v1530_v46 }
  0xe9   : > { %v471_v15 = vpop.f32.mrf.mxu0 }
  0xea   : > { %v472_v16 = vadd.f32 %v1530_v46, %v471_v15  ;;  %1702 = vmatprep.mubr.f32.mxu1 %v508_v13  ;;  %v511_v17 = vmax.f32 %v477_v14, 0.0 }
  0xeb   : > { %v1654_v18 = vpop.f32.mrf.mxu0  ;;  %1703 = vmatmul.mubr.f32.gmra.mxu1 %v509_v11 }
  0xec   : > { %v510_v19 = vmax.f32 %v472_v16, 0.0  ;;  %v487_v20 = vadd.f32 %v1654_v18, %v1530_v46 }
  0xed   : > { %v481_v21 = vpop.f32.mrf.mxu0 }
  0xee   : > { %v482_v22 = vadd.f32 %v1530_v46, %v481_v21  ;;  %1705 = vmatprep.mubr.f32.mxu1 %v510_v19  ;;  %v513_v23 = vmax.f32 %v487_v20, 0.0  ;;  %v1548_v19 = vld [vmem:[%s2673_s6] ss:$0 sm:$0xff] }
  0xef   : > { %v1657_v24 = vpop.f32.mrf.mxu0  ;;  %1706 = vmatmul.mubr.f32.gmra.mxu1 %v511_v17 }
  0xf0   : > { %v512_v25 = vmax.f32 %v482_v22, 0.0  ;;  %v497_v26 = vadd.f32 %v1657_v24, %v1530_v46 }
  0xf1   : > { %v491_v27 = vpop.f32.mrf.mxu0 }
  0xf2   : > { %v492_v28 = vadd.f32 %v1530_v46, %v491_v27  ;;  %1708 = vmatprep.mubr.f32.mxu1 %v512_v25  ;;  %v515_v29 = vmax.f32 %v497_v26, 0.0 }
  0xf3   : > { %1709 = vmatmul.mubr.f32.gmra.mxu1 %v513_v23 }
  0xf4   : > { %v514_v30 = vmax.f32 %v492_v28, 0.0 }
  0xf6   : > { %1711 = vmatprep.mubr.f32.mxu1 %v514_v30 }
  0xf7   : > { %1712 = vmatmul.mubr.f32.gmra.mxu1 %v515_v29 }
 0x19b   : > { %v1692_v35 = vpop.f32.mrf.mxu1 }
 0x19c   : > { %v611_v36 = vadd.f32 %v1692_v35, %v1547_v34 }
 0x19d   : > { %v605_v37 = vpop.f32.mrf.mxu1 }
 0x19e   : > { %v606_v38 = vadd.f32 %v1547_v34, %v605_v37  ;;  %v685_v41 = vmax.f32 %v611_v36, 0.0 }
 0x19f   : > { %v1695_v39 = vpop.f32.mrf.mxu1 }
 0x1a0   : > { %v684_v40 = vmax.f32 %v606_v38, 0.0  ;;  %v621_v42 = vadd.f32 %v1695_v39, %v1547_v34 }
 0x1a1   : > { %v615_v43 = vpop.f32.mrf.mxu1 }
 0x1a2   : > { %v616_v44 = vadd.f32 %v1547_v34, %v615_v43  ;;  %1746 = vmatprep.mubr.f32.mxu0 %v684_v40  ;;  %v687_v47 = vmax.f32 %v621_v42, 0.0 }
 0x1a3   : > { %v1698_v45 = vpop.f32.mrf.mxu1  ;;  %1747 = vmatmul.mubr.f32.vlgmr.msra.gmra.mxu0 %v685_v41 }
 0x1a4   : > { %v686_v46 = vmax.f32 %v616_v44, 0.0  ;;  %v631_v48 = vadd.f32 %v1698_v45, %v1547_v34 }
 0x1a5   : > { %v625_v49 = vpop.f32.mrf.mxu1 }
 0x1a6   : > { %v626_v50 = vadd.f32 %v1547_v34, %v625_v49  ;;  %1749 = vmatprep.mubr.f32.mxu0 %v686_v46  ;;  %v689_v53 = vmax.f32 %v631_v48, 0.0 }
 0x1a7   : > { %v1701_v51 = vpop.f32.mrf.mxu1  ;;  %1750 = vmatmul.mubr.f32.gmra.mxu0 %v687_v47 }
 0x1a8   : > { %v688_v52 = vmax.f32 %v626_v50, 0.0  ;;  %v641_v54 = vadd.f32 %v1701_v51, %v1547_v34 }
 0x1a9   : > { %v635_v55 = vpop.f32.mrf.mxu1 }
 0x1aa   : > { %v636_v56 = vadd.f32 %v1547_v34, %v635_v55  ;;  %1752 = vmatprep.mubr.f32.mxu0 %v688_v52  ;;  %v691_v60 = vmax.f32 %v641_v54, 0.0  ;;  %v1028_v52 = vlaneseq }
 0x1ab   : > { %v1704_v57 = vpop.f32.mrf.mxu1  ;;  %1753 = vmatmul.mubr.f32.gmra.mxu0 %v689_v53 }
 0x1ac   : > { %v690_v58 = vmax.f32 %v636_v56, 0.0  ;;  %v651_v59 = vadd.f32 %v1704_v57, %v1547_v34  ;;  %v2124_v53 = vand.u32 127, %v1028_v52 }
 0x1ad   : > { %v645_v61 = vpop.f32.mrf.mxu1 }
 0x1ae   : > { %v646_v62 = vadd.f32 %v1547_v34, %v645_v61  ;;  %1755 = vmatprep.mubr.f32.mxu0 %v690_v58  ;;  %v693_v63 = vmax.f32 %v651_v59, 0.0 }
 0x1af   : > { %v1707_v0 = vpop.f32.mrf.mxu1  ;;  %1756 = vmatmul.mubr.f32.gmra.mxu0 %v691_v60 }
 0x1b0   : > { %v692_v1 = vmax.f32 %v646_v62, 0.0  ;;  %v661_v2 = vadd.f32 %v1707_v0, %v1547_v34 }
 0x1b1   : > { %v655_v3 = vpop.f32.mrf.mxu1 }
 0x1b2   : > { %v656_v4 = vadd.f32 %v1547_v34, %v655_v3  ;;  %1758 = vmatprep.mubr.f32.mxu0 %v692_v1  ;;  %v695_v5 = vmax.f32 %v661_v2, 0.0 }
 0x1b3   : > { %v1710_v6 = vpop.f32.mrf.mxu1  ;;  %1759 = vmatmul.mubr.f32.gmra.mxu0 %v693_v63 }
 0x1b4   : > { %v694_v7 = vmax.f32 %v656_v4, 0.0  ;;  %v671_v8 = vadd.f32 %v1710_v6, %v1547_v34 }
 0x1b5   : > { %v665_v9 = vpop.f32.mrf.mxu1 }
 0x1b6   : > { %v666_v10 = vadd.f32 %v1547_v34, %v665_v9  ;;  %1761 = vmatprep.mubr.f32.mxu0 %v694_v7  ;;  %v697_v11 = vmax.f32 %v671_v8, 0.0 }
 0x1b7   : > { %v1713_v12 = vpop.f32.mrf.mxu1  ;;  %1762 = vmatmul.mubr.f32.gmra.mxu0 %v695_v5 }
 0x1b8   : > { %v696_v13 = vmax.f32 %v666_v10, 0.0  ;;  %v681_v14 = vadd.f32 %v1713_v12, %v1547_v34 }
 0x1b9   : > { %v675_v15 = vpop.f32.mrf.mxu1 }
 0x1ba   : > { %v676_v16 = vadd.f32 %v1547_v34, %v675_v15  ;;  %1764 = vmatprep.mubr.f32.mxu0 %v696_v13  ;;  %v699_v17 = vmax.f32 %v681_v14, 0.0 }
 0x1bb   : > { %1765 = vmatmul.mubr.f32.gmra.mxu0 %v697_v11 }
 0x1bc   : > { %v698_v18 = vmax.f32 %v676_v16, 0.0 }
 0x1be   : > { %1767 = vmatprep.mubr.f32.mxu0 %v698_v18 }
 0x1bf   : > { %1768 = vmatmul.mubr.f32.gmra.mxu0 %v699_v17 }
 0x263   : > { %v1748_v20 = vpop.f32.mrf.mxu0 }
 0x264   : > { %v795_v21 = vadd.f32 %v1748_v20, %v1548_v19 }
 0x265   : > { %v789_v22 = vpop.f32.mrf.mxu0 }
 0x266   : > { %870 = vmax.xlane.f32.xlu0 %v795_v21  ;;  %v790_v24 = vadd.f32 %v1548_v19, %v789_v22 }
 0x267   : > { %v1751_v23 = vpop.f32.mrf.mxu0 }
 0x268   : > { %v2082_v25 = vadd.f32 %v1751_v23, %v1548_v19 }
 0x269   : > { %v799_v26 = vpop.f32.mrf.mxu0 }
 0x26a   : > { %874 = vmax.xlane.f32.xlu1 %v2082_v25  ;;  %868 = vmax.xlane.f32.xlu0 %v790_v24  ;;  %v2085_v28 = vadd.f32 %v1548_v19, %v799_v26 }
 0x26b   : > { %v1754_v27 = vpop.f32.mrf.mxu0 }
 0x26c   : > { %v2090_v32 = vadd.f32 %v1754_v27, %v1548_v19 }
 0x26d   : > { %v809_v29 = vpop.f32.mrf.mxu0 }
 0x26e   : > { %v2087_v30 = vadd.f32 %v1548_v19, %v809_v29  ;;  %872 = vmax.xlane.f32.xlu1 %v2085_v28 }
 0x26f   : > { %v1757_v31 = vpop.f32.mrf.mxu0 }
 0x270   : > { %876 = vmax.xlane.f32.xlu0 %v2087_v30  ;;  %v2096_v36 = vadd.f32 %v1757_v31, %v1548_v19 }
 0x271   : > { %v819_v33 = vpop.f32.mrf.mxu0 }
 0x272   : > { %v2093_v34 = vadd.f32 %v1548_v19, %v819_v33  ;;  %878 = vmax.xlane.f32.xlu1 %v2090_v32 }
 0x273   : > { %v1760_v35 = vpop.f32.mrf.mxu0 }
 0x274   : > { %880 = vmax.xlane.f32.xlu0 %v2093_v34  ;;  %v2099_v38 = vadd.f32 %v1760_v35, %v1548_v19 }
 0x275   : > { %v829_v37 = vpop.f32.mrf.mxu0 }
 0x276   : > { %v2101_v39 = vadd.f32 %v1548_v19, %v829_v37  ;;  %882 = vmax.xlane.f32.xlu1 %v2096_v36 }
 0x277   : > { %v1763_v40 = vpop.f32.mrf.mxu0 }
 0x278   : > { %884 = vmax.xlane.f32.xlu0 %v2101_v39  ;;  %v2105_v42 = vadd.f32 %v1763_v40, %v1548_v19 }
 0x279   : > { %v839_v41 = vpop.f32.mrf.mxu0 }
 0x27a   : > { %v2107_v43 = vadd.f32 %v1548_v19, %v839_v41  ;;  %886 = vmax.xlane.f32.xlu1 %v2099_v38 }
 0x27b   : > { %v1766_v44 = vpop.f32.mrf.mxu0 }
 0x27c   : > { %888 = vmax.xlane.f32.xlu0 %v2107_v43  ;;  %v2111_v46 = vadd.f32 %v1766_v44, %v1548_v19 }
 0x27d   : > { %v849_v45 = vpop.f32.mrf.mxu0 }
 0x27e   : > { %v2113_v47 = vadd.f32 %v1548_v19, %v849_v45  ;;  %890 = vmax.xlane.f32.xlu1 %v2105_v42 }
 0x27f   : > { %v1769_v48 = vpop.f32.mrf.mxu0 }
 0x280   : > { %892 = vmax.xlane.f32.xlu0 %v2113_v47  ;;  %v2117_v50 = vadd.f32 %v1769_v48, %v1548_v19 }
 0x281   : > { %v859_v49 = vpop.f32.mrf.mxu0 }
 0x282   : > { %v2119_v51 = vadd.f32 %v1548_v19, %v859_v49  ;;  %894 = vmax.xlane.f32.xlu1 %v2111_v46 }
 0x284   : > { %896 = vmax.xlane.f32.xlu0 %v2119_v51 }
 0x286   : > { %898 = vmax.xlane.f32.xlu1 %v2117_v50 }
 0x2ef   : > { %v871_v54 = vpop.xlane.xlu0 %870 }
 0x2f0   : > { %vm1031_vm1 = vcmp.eq.f32.partialorder %v795_v21, %v871_v54  ;;  %v2130_v59 = vsub.f32 %v795_v21, %v871_v54 }
 0x2f1   : > { %v2127_v55 = vsel %vm1031_vm1, %v2124_v53, 128 }
 0x2f2   : > { %v1077_v56 = vshra.s32 %v2127_v55, 16  ;;  %v918_v3 = vmul.f32 1.442695, %v2130_v59 }
 0x2f3   : > { %v875_v57 = vpop.xlane.xlu1 %874  ;;  %v869_v58 = vpop.xlane.xlu0 %868 }
 0x2f4   : > { %vm1033_vm2 = vcmp.eq.f32.partialorder %v2082_v25, %v875_v57  ;;  %v2136_v61 = vsub.f32 %v790_v24, %v869_v58  ;;  %vm1030_vm3 = vcmp.eq.f32.partialorder %v790_v24, %v869_v58  ;;  %v2138_v62 = vcvt.s32.f32 %v1077_v56 }
 0x2f5   : > { %v2134_v60 = vsel %vm1033_vm2, %v2124_v53, 128  ;;  %v2141_v63 = vsel %vm1030_vm3, %v2124_v53, 128  ;;  %1779 = vpow2.f32 %v918_v3  ;;  %v2177_v19 = vsub.f32 %v2082_v25, %v875_v57 }
 0x2f6   : > { %v1105_v0 = vshra.s32 %v2134_v60, 16  ;;  %1080 = vmin.xlane.f32.xlu1 %v2138_v62  ;;  %v1063_v2 = vshra.s32 %v2141_v63, 16  ;;  %v916_v5 = vmul.f32 1.442695, %v2136_v61 }
 0x2f7   : > { %v873_v1 = vpop.xlane.xlu1 %872 }
 0x2f8   : > { %vm1032_vm4 = vcmp.eq.f32.partialorder %v2085_v28, %v873_v1  ;;  %v2148_v4 = vcvt.s32.f32 %v1105_v0  ;;  %v2154_v8 = vcvt.s32.f32 %v1063_v2  ;;  %1781 = vpow2.f32 %v916_v5 }
 0x2f9   : > { %v2152_v6 = vsel %vm1032_vm4, %v2124_v53, 128  ;;  %v877_v7 = vpop.xlane.xlu0 %876  ;;  %v2180_v20 = vsub.f32 %v2085_v28, %v873_v1  ;;  %v922_v28 = vmul.f32 1.442695, %v2177_v19 }
 0x2fa   : > { %vm1034_vm5 = vcmp.eq.f32.partialorder %v2087_v30, %v877_v7  ;;  %v1091_v9 = vshra.s32 %v2152_v6, 16  ;;  %1108 = vmin.xlane.f32.xlu1 %v2148_v4  ;;  %1066 = vmin.xlane.f32.xlu0 %v2154_v8  ;;  %v2215_v40 = vsub.f32 %v2087_v30, %v877_v7 }
 0x2fb   : > { %v2159_v10 = vsel %vm1034_vm5, %v2124_v53, 128  ;;  %v879_v11 = vpop.xlane.xlu1 %878  ;;  %v920_v29 = vmul.f32 1.442695, %v2180_v20  ;;  %1783 = vpow2.f32 %v922_v28 }
 0x2fc   : > { %vm1035_vm6 = vcmp.eq.f32.partialorder %v2090_v32, %v879_v11  ;;  %v2167_v14 = vcvt.s32.f32 %v1091_v9  ;;  %v1119_v15 = vshra.s32 %v2159_v10, 16  ;;  %v2218_v41 = vsub.f32 %v2090_v32, %v879_v11 }
 0x2fd   : > { %v2165_v12 = vsel %vm1035_vm6, %v2124_v53, 128  ;;  %v881_v13 = vpop.xlane.xlu0 %880  ;;  %1785 = vpow2.f32 %v920_v29  ;;  %v924_v30 = vmul.f32 1.442695, %v2215_v40 }
 0x2fe   : > { %vm1036_vm7 = vcmp.eq.f32.partialorder %v2093_v34, %v881_v13  ;;  %1094 = vmin.xlane.f32.xlu0 %v2167_v14  ;;  %v1133_v18 = vshra.s32 %v2165_v12, 16  ;;  %v2190_v24 = vcvt.s32.f32 %v1119_v15  ;;  %v926_v32 = vmul.f32 1.442695, %v2218_v41 }
 0x2ff   : > { %v2172_v16 = vsel %vm1036_vm7, %v2124_v53, 128  ;;  %v883_v17 = vpop.xlane.xlu1 %882  ;;  %1787 = vpow2.f32 %v924_v30 }
 0x300   : > { %vm1037_vm8 = vcmp.eq.f32.partialorder %v2096_v36, %v883_v17  ;;  %v2188_v23 = vcvt.s32.f32 %v1133_v18  ;;  %v1147_v26 = vshra.s32 %v2172_v16, 16  ;;  %1789 = vpow2.f32 %v926_v32 }
 0x301   : > { %v2184_v21 = vsel %vm1037_vm8, %v2124_v53, 128  ;;  %v2186_v22 = vpop.xlane.xlu0 %884  ;;  %v2246_v7 = vsub.f32 %v2096_v36, %v883_v17 }
 0x302   : > { %1136 = vmin.xlane.f32.xlu1 %v2188_v23  ;;  %1122 = vmin.xlane.f32.xlu0 %v2190_v24  ;;  %v1161_v27 = vshra.s32 %v2184_v21, 16  ;;  %v2204_v35 = vcvt.s32.f32 %v1147_v26  ;;  %vm1038_vm9 = vcmp.eq.f32.partialorder %v2101_v39, %v2186_v22  ;;  %v1780_v44 = vpop.eup %1779 }
 0x303   : > { %v2195_v25 = vpop.xlane.xlu1 %886  ;;  %v2223_v49 = vsel %vm1038_vm9, %v2124_v53, 128  ;;  %v1303_v57 = vmul.f32 %v1780_v44, %v2130_v59  ;;  %v2242_v59 = vsub.f32 %v2093_v34, %v881_v13  ;;  %v930_v17 = vmul.f32 1.442695, %v2246_v7 }
 0x304   : > { %v2202_v33 = vcvt.s32.f32 %v1161_v27  ;;  %vm1039_vm10 = vcmp.eq.f32.partialorder %v2099_v38, %v2195_v25  ;;  %v1175_v1 = vshra.s32 %v2223_v49, 16  ;;  %v2270_v29 = vsub.f32 %v2099_v38, %v2195_v25 }
 0x305   : > { %v2200_v31 = vpop.xlane.xlu0 %888  ;;  %v1782_v48 = vpop.eup %1781  ;;  %v2226_v52 = vsel %vm1039_vm10, %v2124_v53, 128  ;;  %v928_v13 = vmul.f32 1.442695, %v2242_v59 }
 0x306   : > { %1164 = vmin.xlane.f32.xlu1 %v2202_v33  ;;  %1150 = vmin.xlane.f32.xlu0 %v2204_v35  ;;  %v1302_v58 = vmul.f32 %v1782_v48, %v2136_v61  ;;  %v1189_v0 = vshra.s32 %v2226_v52, 16  ;;  %vm1040_vm11 = vcmp.eq.f32.partialorder %v2107_v43, %v2200_v31  ;;  %v2250_v11 = vcvt.s32.f32 %v1175_v1 }
 0x307   : > { %v2212_v37 = vpop.xlane.xlu1 %890  ;;  %v2253_v15 = vsel %vm1040_vm11, %v2124_v53, 128 }
 0x308   : > { %vm1041_vm12 = vcmp.eq.f32.partialorder %v2105_v42, %v2212_v37  ;;  %v2248_v9 = vcvt.s32.f32 %v1189_v0  ;;  %v1784_v36 = vpop.eup %1783  ;;  %v1203_v27 = vshra.s32 %v2253_v15, 16 }
 0x309   : > { %v2220_v45 = vpop.xlane.xlu0 %892  ;;  %v2256_v18 = vsel %vm1041_vm12, %v2124_v53, 128 }
 0x30a   : > { %950 = vadd.xlane.f32.xlu1 %v1780_v44  ;;  %948 = vadd.xlane.f32.xlu0 %v1782_v48  ;;  %v1217_v26 = vshra.s32 %v2256_v18, 16  ;;  %v1786_v28 = vpop.eup %1785  ;;  %vm1042_vm13 = vcmp.eq.f32.partialorder %v2113_v47, %v2220_v45  ;;  %v2274_v48 = vcvt.s32.f32 %v1203_v27 }
 0x30b   : > { %v2228_v54 = vpop.xlane.xlu1 %894  ;;  %v2277_v30 = vsel %vm1042_vm13, %v2124_v53, 128 }
 0x30c   : > { %vm1043_vm14 = vcmp.eq.f32.partialorder %v2111_v46, %v2228_v54  ;;  %v2272_v44 = vcvt.s32.f32 %v1217_v26  ;;  %v1231_v25 = vshra.s32 %v2277_v30, 16 }
 0x30d   : > { %v897_v56 = vpop.xlane.xlu0 %896  ;;  %v2280_v32 = vsel %vm1043_vm14, %v2124_v53, 128 }
 0x30e   : > { %v914_v2 = vsub.f32 %v2119_v51, %v897_v56  ;;  %1320 = vadd.xlane.f32.xlu1 %v1303_v57  ;;  %1318 = vadd.xlane.f32.xlu0 %v1302_v58  ;;  %v1788_v57 = vpop.eup %1787  ;;  %v934_v58 = vmul.f32 1.442695, %v2270_v29  ;;  %v1245_v38 = vshra.s32 %v2280_v32, 16  ;;  %vm1044_vm15 = vcmp.eq.f32.partialorder %v2119_v51, %v897_v56 }
 0x30f   : > { %v899_v3 = vpop.xlane.xlu1 %898  ;;  %v1790_v0 = vpop.eup %1789  ;;  %v2301_v26 = vsel %vm1044_vm15, %v2124_v53, 128  ;;  %v908_v56 = vsub.f32 %v2101_v39, %v2186_v22  ;;  %v911_v39 = vsub.f32 %v2105_v42, %v2212_v37  ;;  %v1304_v22 = vmul.f32 %v1786_v28, %v2180_v20 }
 0x310   : > { %v944_v61 = vmul.f32 1.442695, %v914_v2  ;;  %v915_v5 = vsub.f32 %v2117_v50, %v899_v3  ;;  %vm1045_vm1 = vcmp.eq.f32.partialorder %v2117_v50, %v899_v3  ;;  %v1259_v3 = vshra.s32 %v2301_v26, 16 }
 0x311   : > { %v2304_v27 = vsel %vm1045_vm1, %v2124_v53, 128  ;;  %v932_v53 = vmul.f32 1.442695, %v908_v56  ;;  %v913_v42 = vsub.f32 %v2111_v46, %v2228_v54  ;;  %v1307_v20 = vmul.f32 %v1790_v0, %v2218_v41 }
 0x312   : > { %1791 = vpow2.f32 %v944_v61  ;;  %v946_v34 = vmul.f32 1.442695, %v915_v5  ;;  %1192 = vmin.xlane.f32.xlu1 %v2248_v9  ;;  %1178 = vmin.xlane.f32.xlu0 %v2250_v11 }
 0x314   : > { %1793 = vpow2.f32 %v946_v34 }
 0x315   : > { %1795 = vpow2.f32 %v928_v13  ;;  %v2296_v13 = vcvt.s32.f32 %v1245_v38 }
 0x316   : > { %954 = vadd.xlane.f32.xlu1 %v1784_v36  ;;  %952 = vadd.xlane.f32.xlu0 %v1786_v28  ;;  %1797 = vpow2.f32 %v930_v17  ;;  %v2298_v17 = vcvt.s32.f32 %v1231_v25  ;;  %v910_v25 = vsub.f32 %v2107_v43, %v2200_v31  ;;  %v912_v43 = vsub.f32 %v2113_v47, %v2220_v45 }
 0x317   : > { %1799 = vpow2.f32 %v934_v58 }
 0x318   : > { %1801 = vpow2.f32 %v932_v53  ;;  %v940_v37 = vmul.f32 1.442695, %v912_v43 }
 0x31a   : > { %1220 = vmin.xlane.f32.xlu1 %v2272_v44  ;;  %1206 = vmin.xlane.f32.xlu0 %v2274_v48 }
 0x31e   : > { %958 = vadd.xlane.f32.xlu1 %v1790_v0  ;;  %956 = vadd.xlane.f32.xlu0 %v1788_v57 }
 0x31f   : > { %v2287_v1 = vpop.eup %1791 }
 0x320   : > { %v2292_v61 = vmul.f32 %v2287_v1, %v914_v2  ;;  %v1273_v2 = vshra.s32 %v2304_v27, 16 }
 0x321   : > { %v2294_v34 = vpop.eup %1793 }
 0x322   : > { %2676 = vst [vmem:[#allocation2_spill] sm:$0xff] %v2292_v61  ;;  %v2307_v50 = vmul.f32 %v2294_v34, %v915_v5  ;;  %1248 = vmin.xlane.f32.xlu1 %v2296_v13  ;;  %1234 = vmin.xlane.f32.xlu0 %v2298_v17  ;;  %v1796_v51 = vpop.eup %1795  ;;  %v2315_v38 = vcvt.s32.f32 %v1273_v2  ;;  %v2317_v5 = vcvt.s32.f32 %v1259_v3  ;;  %v936_v2 = vmul.f32 1.442695, %v910_v25 }
 0x323   : > { %v1798_v58 = vpop.eup %1797  ;;  %v1305_v3 = vmul.f32 %v1784_v36, %v2177_v19  ;;  %v1308_v31 = vmul.f32 %v1796_v51, %v2242_v59  ;;  %v942_v19 = vmul.f32 1.442695, %v913_v42 }
 0x324   : > { %2677 = vst [vmem:[#allocation3_spill] sm:$0xff] %v2307_v50  ;;  %2678 = vst [vmem:[#allocation4_spill] sm:$0xff] %v2315_v38  ;;  %v1800_v61 = vpop.eup %1799  ;;  %v938_v50 = vmul.f32 1.442695, %v911_v39  ;;  %1803 = vpow2.f32 %v936_v2  ;;  %v1118_v2 = vand.u32 65535, %v2159_v10 }
 0x325   : > { %v1802_v36 = vpop.eup %1801  ;;  %v1311_v47 = vmul.f32 %v1800_v61, %v2270_v29  ;;  %v1883_v29 = vmov 0.0  }
 0x326   : > { %962 = vadd.xlane.f32.xlu1 %v1798_v58  ;;  %960 = vadd.xlane.f32.xlu0 %v1796_v51  ;;  %1805 = vpow2.f32 %v938_v50  ;;  %v1310_v45 = vmul.f32 %v1802_v36, %v908_v56  ;;  %1383 = vst.msk [vmem:[%s2343_s22 + $0x8] sm:$0xff] %vm306_vm0, %v1883_v29  ;;  %1382 = vst.msk [vmem:[%s2343_s22] sm:$0xff] %vm306_vm0, %v1883_v29  ;;  %v1104_v50 = vand.u32 65535, %v2134_v60  ;;  %v1062_v51 = vand.u32 65535, %v2141_v63 }
 0x327   : > { %1807 = vpow2.f32 %v940_v37  ;;  %1384 = vst.msk [vmem:[%s2343_s22 + $0x10] sm:$0xff] %vm306_vm0, %v1883_v29  ;;  %1385 = vst.msk [vmem:[%s2343_s22 + $0x18] sm:$0xff] %vm306_vm0, %v1883_v29 }
 0x328   : > { %1809 = vpow2.f32 %v942_v19  ;;  %1386 = vst.msk [vmem:[%s2343_s22 + $0x20] sm:$0xff] %vm306_vm0, %v1883_v29  ;;  %1387 = vst.msk [vmem:[%s2343_s22 + $0x28] sm:$0xff] %vm306_vm0, %v1883_v29 }
 0x329   : > { %1388 = vst.msk [vmem:[%s2343_s22 + $0x30] sm:$0xff] %vm306_vm0, %v1883_v29  ;;  %1389 = vst.msk [vmem:[%s2343_s22 + $0x38] sm:$0xff] %vm306_vm0, %v1883_v29 }
 0x32a   : > { %1276 = vmin.xlane.f32.xlu1 %v2315_v38  ;;  %1262 = vmin.xlane.f32.xlu0 %v2317_v5  ;;  %v1306_v38 = vmul.f32 %v1788_v57, %v2215_v40  ;;  %v1309_v40 = vmul.f32 %v1798_v58, %v2246_v7  ;;  %1390 = vst.msk [vmem:[%s2343_s22 + $0x40] sm:$0xff] %vm306_vm0, %v1883_v29  ;;  %1391 = vst.msk [vmem:[%s2343_s22 + $0x48] sm:$0xff] %vm306_vm0, %v1883_v29 }
 0x32b   : > { %1392 = vst.msk [vmem:[%s2343_s22 + $0x50] sm:$0xff] %vm306_vm0, %v1883_v29  ;;  %1393 = vst.msk [vmem:[%s2343_s22 + $0x58] sm:$0xff] %vm306_vm0, %v1883_v29 }
 0x32c   : > { %1394 = vst.msk [vmem:[%s2343_s22 + $0x60] sm:$0xff] %vm306_vm0, %v1883_v29  ;;  %1395 = vst.msk [vmem:[%s2343_s22 + $0x68] sm:$0xff] %vm306_vm0, %v1883_v29 }
 0x32d   : > { %1396 = vst.msk [vmem:[%s2343_s22 + $0x70] sm:$0xff] %vm306_vm0, %v1883_v29  ;;  %1397 = vst.msk [vmem:[%s2343_s22 + $0x78] sm:$0xff] %vm306_vm0, %v1883_v29 }
 0x32e   : > { %966 = vadd.xlane.f32.xlu1 %v1800_v61  ;;  %1322 = vadd.xlane.f32.xlu0 %v1304_v22  ;;  %v1132_v22 = vand.u32 65535, %v2165_v12 }
 0x331   : > { %v1804_v46 = vpop.eup %1803 }
 0x332   : > { %1324 = vadd.xlane.f32.xlu1 %v1305_v3  ;;  %1326 = vadd.xlane.f32.xlu0 %v1306_v38  ;;  %v1312_v59 = vmul.f32 %v1804_v46, %v910_v25  ;;  %v1106_v38 = vcvt.s32.f32 %v1104_v50  ;;  %v1064_v25 = vcvt.s32.f32 %v1062_v51 }
 0x333   : > { %v1806_v41 = vpop.eup %1805 }
 0x334   : > { %v1313_v54 = vmul.f32 %v1806_v41, %v911_v39  ;;  %v1808_v7 = vpop.eup %1807 }
 0x335   : > { %v1810_v28 = vpop.eup %1809  ;;  %v1314_v0 = vmul.f32 %v1808_v7, %v912_v43  ;;  %v1120_v43 = vcvt.s32.f32 %v1118_v2 }
 0x336   : > { %1328 = vadd.xlane.f32.xlu1 %v1307_v20  ;;  %1330 = vadd.xlane.f32.xlu0 %v1308_v31  ;;  %v1315_v57 = vmul.f32 %v1810_v28, %v913_v42  ;;  %v1160_v42 = vand.u32 65535, %v2184_v21  ;;  %v1146_v20 = vand.u32 65535, %v2172_v16 }
 0x338   : > { %v1162_v37 = vcvt.s32.f32 %v1160_v42  ;;  %v1148_v19 = vcvt.s32.f32 %v1146_v20 }
 0x33a   : > { %1332 = vadd.xlane.f32.xlu1 %v1309_v40  ;;  %964 = vadd.xlane.f32.xlu0 %v1802_v36 }
 0x33e   : > { %1336 = vadd.xlane.f32.xlu1 %v1311_v47  ;;  %1334 = vadd.xlane.f32.xlu0 %v1310_v45  ;;  %v1188_v47 = vand.u32 65535, %v2226_v52  ;;  %v1174_v45 = vand.u32 65535, %v2223_v49  ;;  %v1216_v49 = vand.u32 65535, %v2256_v18 }
 0x340   : > { %v1218_v50 = vcvt.s32.f32 %v1216_v49 }
 0x342   : > { %970 = vadd.xlane.f32.xlu1 %v1806_v41  ;;  %968 = vadd.xlane.f32.xlu0 %v1804_v46  ;;  %v1176_v41 = vcvt.s32.f32 %v1174_v45 }
 0x346   : > { %1340 = vadd.xlane.f32.xlu1 %v1313_v54  ;;  %1338 = vadd.xlane.f32.xlu0 %v1312_v59 }
 0x34a   : > { %974 = vadd.xlane.f32.xlu1 %v1810_v28  ;;  %972 = vadd.xlane.f32.xlu0 %v1808_v7 }
 0x34e   : > { %1344 = vadd.xlane.f32.xlu1 %v1315_v57  ;;  %1342 = vadd.xlane.f32.xlu0 %v1314_v0  ;;  %v1202_v57 = vand.u32 65535, %v2253_v15 }
 0x352   : > { %978 = vadd.xlane.f32.xlu1 %v2294_v34  ;;  %976 = vadd.xlane.f32.xlu0 %v2287_v1  ;;  %v1076_v1 = vand.u32 65535, %v2127_v55  ;;  %v1090_v55 = vand.u32 65535, %v2152_v6 }
 0x354   : > { %v1078_v34 = vcvt.s32.f32 %v1076_v1  ;;  %v1092_v39 = vcvt.s32.f32 %v1090_v55 }
 0x37f   : > { %v2378_v61 = vpop.xlane.xlu1 %1080 }
 0x380   : > { %vm1082_vm2 = vcmp.eq.f32.partialorder %v2138_v62, %v2378_v61 }
 0x381   : > { %v1083_v56 = vsel %vm1082_vm2, %v1078_v34, inf  ;;  %vm1414_vm2 = vcmask 7168  }
 0x382   : > { %1084 = vmin.xlane.f32.xlu1 %v1083_v56 }
 0x383   : > { %v2384_v58 = vpop.xlane.xlu1 %1108  ;;  %v2386_v53 = vpop.xlane.xlu0 %1066 }
 0x384   : > { %vm1110_vm0 = vcmp.eq.f32.partialorder %v2148_v4, %v2384_v58  ;;  %vm1068_vm3 = vcmp.eq.f32.partialorder %v2154_v8, %v2386_v53  ;;  %v1134_v8 = vcvt.s32.f32 %v1132_v22  ;;  %v1244_v22 = vand.u32 65535, %v2280_v32 }
 0x385   : > { %v1111_v60 = vsel %vm1110_vm0, %v1106_v38, inf  ;;  %v1069_v63 = vsel %vm1068_vm3, %v1064_v25, inf  ;;  %v1204_v25 = vcvt.s32.f32 %v1202_v57  ;;  %vm1431_vm0 = vcmask 15368  }
 0x386   : > { %1112 = vmin.xlane.f32.xlu1 %v1111_v60  ;;  %1070 = vmin.xlane.f32.xlu0 %v1069_v63  ;;  %vm1448_vm3 = vcmask 23568  }
 0x387   : > { %v2393_v62 = vpop.xlane.xlu0 %1094 }
 0x388   : > { %vm1096_vm4 = vcmp.eq.f32.partialorder %v2167_v14, %v2393_v62 }
 0x389   : > { %v1097_v6 = vsel %vm1096_vm4, %v1092_v39, inf }
 0x38a   : > { %1098 = vmin.xlane.f32.xlu0 %v1097_v6 }
 0x38b   : > { %v2399_v4 = vpop.xlane.xlu1 %1136  ;;  %v2401_v3 = vpop.xlane.xlu0 %1122 }
 0x38c   : > { %vm1138_vm5 = vcmp.eq.f32.partialorder %v2188_v23, %v2399_v4  ;;  %vm1124_vm6 = vcmp.eq.f32.partialorder %v2190_v24, %v2401_v3 }
 0x38d   : > { %v1139_v10 = vsel %vm1138_vm5, %v1134_v8, inf  ;;  %v1125_v12 = vsel %vm1124_vm6, %v1120_v43, inf  ;;  %v1246_v8 = vcvt.s32.f32 %v1244_v22  ;;  %v1073_v22 = vcvt.f32.s32 %v2386_v53 }
 0x38e   : > { %1140 = vmin.xlane.f32.xlu1 %v1139_v10  ;;  %1126 = vmin.xlane.f32.xlu0 %v1125_v12  ;;  %v1258_v10 = vand.u32 65535, %v2301_v26 }
 0x38f   : > { %v2409_v14 = vpop.xlane.xlu1 %1164  ;;  %v2411_v31 = vpop.xlane.xlu0 %1150 }
 0x390   : > { %vm1166_vm7 = vcmp.eq.f32.partialorder %v2202_v33, %v2409_v14  ;;  %vm1152_vm8 = vcmp.eq.f32.partialorder %v2204_v35, %v2411_v31  ;;  %v1190_v35 = vcvt.s32.f32 %v1188_v47 }
 0x391   : > { %v1167_v16 = vsel %vm1166_vm7, %v1162_v37, inf  ;;  %v1153_v21 = vsel %vm1152_vm8, %v1148_v19, inf }
 0x392   : > { %1168 = vmin.xlane.f32.xlu1 %v1167_v16  ;;  %1154 = vmin.xlane.f32.xlu0 %v1153_v21  ;;  %v1260_v16 = vcvt.s32.f32 %v1258_v10 }
 0x393   : > { %v951_v23 = vpop.xlane.xlu1 %950  ;;  %v949_v24 = vpop.xlane.xlu0 %948 }
 0x394   : > { %1811 = vrcp.f32 %v951_v23 }
 0x395   : > { %1813 = vlog2.f32 %v951_v23  ;;  %v2680_v23 = vld [vmem:[#allocation3_spill] sm:$0xff] }
 0x396   : > { %1815 = vrcp.f32 %v949_v24 }
 0x397   : > { %1817 = vlog2.f32 %v949_v24  ;;  %v1321_v40 = vpop.xlane.xlu1 %1320  ;;  %v1319_v36 = vpop.xlane.xlu0 %1318 }
 0x39b   : > { %v2419_v33 = vpop.xlane.xlu1 %1192  ;;  %v2421_v46 = vpop.xlane.xlu0 %1178 }
 0x39c   : > { %vm1194_vm9 = vcmp.eq.f32.partialorder %v2248_v9, %v2419_v33  ;;  %vm1180_vm10 = vcmp.eq.f32.partialorder %v2250_v11, %v2421_v46 }
 0x39d   : > { %v1195_v54 = vsel %vm1194_vm9, %v1190_v35, inf  ;;  %v1181_v59 = vsel %vm1180_vm10, %v1176_v41, inf }
 0x39e   : > { %1196 = vmin.xlane.f32.xlu1 %v1195_v54  ;;  %1182 = vmin.xlane.f32.xlu0 %v1181_v59 }
 0x39f   : > { %v2427_v7 = vpop.xlane.xlu1 %954  ;;  %v2429_v52 = vpop.xlane.xlu0 %952 }
 0x3a0   : > { %1819 = vlog2.f32 %v2427_v7 }
 0x3a1   : > { %v1812_v28 = vpop.eup %1811  ;;  %1821 = vrcp.f32 %v2427_v7 }
 0x3a2   : > { %v1814_v0 = vpop.eup %1813  ;;  %v2433_v29 = vmul.f32 %v1812_v28, %v1321_v40  ;;  %1823 = vrcp.f32 %v2429_v52 }
 0x3a3   : > { %v1816_v9 = vpop.eup %1815  ;;  %v2435_v1 = vmul.f32 0.6931472, %v1814_v0  ;;  %v2437_v11 = vpop.xlane.xlu1 %1220  ;;  %1825 = vlog2.f32 %v2429_v52 }
 0x3a4   : > { %v2439_v34 = vpop.xlane.xlu0 %1206  ;;  %v1818_v51 = vpop.eup %1817  ;;  %v2441_v56 = vmul.f32 %v1816_v9, %v1319_v36  ;;  %vm1222_vm11 = vcmp.eq.f32.partialorder %v2272_v44, %v2437_v11  ;;  %v1230_v44 = vand.u32 65535, %v2277_v30  ;;  %v1272_v30 = vand.u32 65535, %v2304_v27  ;;  %v2681_v27 = vld [vmem:[#allocation2_spill] sm:$0xff] }
 0x3a5   : > { %v1367_v15 = vsub.f32 %v2435_v1, %v2433_v29  ;;  %v2447_v18 = vmul.f32 0.6931472, %v1818_v51  ;;  %v1223_v38 = vsel %vm1222_vm11, %v1218_v50, inf  ;;  %vm1208_vm12 = vcmp.eq.f32.partialorder %v2274_v48, %v2439_v34 }
 0x3a6   : > { %1224 = vmin.xlane.f32.xlu1 %v1223_v38  ;;  %v1209_v60 = vsel %vm1208_vm12, %v1204_v25, inf  ;;  %v1232_v43 = vcvt.s32.f32 %v1230_v44  ;;  %v1274_v19 = vcvt.s32.f32 %v1272_v30  ;;  %v1087_v25 = vcvt.f32.s32 %v2378_v61 }
 0x3a7   : > { %v1366_v55 = vsub.f32 %v2447_v18, %v2441_v56  ;;  %v959_v63 = vpop.xlane.xlu1 %958  ;;  %1210 = vmin.xlane.f32.xlu0 %v1209_v60  ;;  %v1115_v60 = vcvt.f32.s32 %v2384_v58  ;;  %v1074_v30 = vshll.u32 %v1073_v22, 16  ;;  %v1101_v61 = vcvt.f32.s32 %v2393_v62 }
 0x3a8   : > { %v957_v39 = vpop.xlane.xlu0 %956  ;;  %1827 = vlog2.f32 %v959_v63  ;;  %v1129_v62 = vcvt.f32.s32 %v2401_v3 }
 0x3a9   : > { %1829 = vlog2.f32 %v957_v39 }
 0x3aa   : > { %1831 = vrcp.f32 %v959_v63 }
 0x3ab   : > { %v2455_v2 = vpop.xlane.xlu1 %1248  ;;  %1833 = vrcp.f32 %v957_v39 }
 0x3ac   : > { %v2457_v6 = vpop.xlane.xlu0 %1234  ;;  %vm1250_vm13 = vcmp.eq.f32.partialorder %v2296_v13, %v2455_v2  ;;  %v2679_v13 = vld [vmem:[#allocation4_spill] sm:$0xff] }
 0x3ad   : > { %vm1236_vm14 = vcmp.eq.f32.partialorder %v2298_v17, %v2457_v6  ;;  %v1251_v48 = vsel %vm1250_vm13, %v1246_v8, inf  ;;  %v1088_v8 = vshll.u32 %v1087_v25, 16 }
 0x3ae   : > { %v1237_v42 = vsel %vm1236_vm14, %v1232_v43, inf  ;;  %1252 = vmin.xlane.f32.xlu1 %v1251_v48  ;;  %v1820_v43 = vpop.eup %1819 }
 0x3af   : > { %1238 = vmin.xlane.f32.xlu0 %v1237_v42  ;;  %v963_v32 = vpop.xlane.xlu1 %962  ;;  %v1116_v42 = vshll.u32 %v1115_v60, 16  ;;  %v1822_v63 = vpop.eup %1821  ;;  %v1171_v60 = vcvt.f32.s32 %v2409_v14 }
 0x3b0   : > { %v961_v20 = vpop.xlane.xlu0 %960  ;;  %1835 = vlog2.f32 %v963_v32 }
 0x3b1   : > { %1837 = vlog2.f32 %v961_v20 }
 0x3b2   : > { %1839 = vrcp.f32 %v961_v20 }
 0x3b3   : > { %v2465_v12 = vpop.xlane.xlu1 %1276  ;;  %1841 = vrcp.f32 %v963_v32 }
 0x3b4   : > { %v2467_v37 = vpop.xlane.xlu0 %1262  ;;  %vm1278_vm15 = vcmp.eq.f32.partialorder %v2679_v13, %v2465_v12  ;;  %v1143_v13 = vcvt.f32.s32 %v2399_v4 }
 0x3b5   : > { %vm1264_vm1 = vcmp.eq.f32.partialorder %v2317_v5, %v2467_v37  ;;  %v1279_v17 = vsel %vm1278_vm15, %v1274_v19, inf }
 0x3b6   : > { %v1265_v21 = vsel %vm1264_vm1, %v1260_v16, inf  ;;  %1280 = vmin.xlane.f32.xlu1 %v1279_v17  ;;  %v1824_v16 = vpop.eup %1823  ;;  %v1287_v17 = vsub.f32 0.0, %v2435_v1 }
 0x3b7   : > { %1266 = vmin.xlane.f32.xlu0 %v1265_v21  ;;  %v2475_v26 = vpop.xlane.xlu1 %966  ;;  %v1003_v21 = vmul.f32 0.6931472, %v1820_v43 }
 0x3b8   : > { %v2477_v24 = vpop.xlane.xlu0 %1322  ;;  %1843 = vlog2.f32 %v2475_v26 }
 0x3b9   : > { %v1352_v43 = vmul.f32 %v1824_v16, %v2477_v24 }
 0x3ba   : > { %1348 = vadd.xlane.f32.xlu1 %v2680_v23  ;;  %v1826_v23 = vpop.eup %1825 }
 0x3bb   : > { %1346 = vadd.xlane.f32.xlu0 %v2681_v27  ;;  %v1325_v40 = vpop.xlane.xlu1 %1324  ;;  %v1828_v25 = vpop.eup %1827  ;;  %v1001_v14 = vmul.f32 0.6931472, %v1826_v23 }
 0x3bc   : > { %v2479_v36 = vpop.xlane.xlu0 %1326  ;;  %v1353_v20 = vmul.f32 %v1822_v63, %v1325_v40  ;;  %v1830_v22 = vpop.eup %1829  ;;  %v1007_v63 = vmul.f32 0.6931472, %v1828_v25 }
 0x3bd   : > { %v1832_v1 = vpop.eup %1831 }
 0x3bf   : > { %v2481_v47 = vpop.xlane.xlu1 %1328 }
 0x3c0   : > { %v2483_v45 = vpop.xlane.xlu0 %1330 }
 0x3c3   : > { %v2485_v5 = vpop.xlane.xlu1 %1332 }
 0x3c4   : > { %v2487_v35 = vpop.xlane.xlu0 %964 }
 0x3c5   : > { %1845 = vlog2.f32 %v2487_v35 }
 0x3c6   : > { %1847 = vrcp.f32 %v2487_v35 }
 0x3c7   : > { %v2489_v41 = vpop.xlane.xlu1 %1336  ;;  %1849 = vrcp.f32 %v2475_v26 }
 0x3c8   : > { %v2491_v54 = vpop.xlane.xlu0 %1334 }
 0x3cb   : > { %v2493_v59 = vpop.xlane.xlu1 %970 }
 0x3cc   : > { %v2495_v49 = vpop.xlane.xlu0 %968  ;;  %1851 = vlog2.f32 %v2493_v59 }
 0x3cd   : > { %1853 = vrcp.f32 %v2493_v59 }
 0x3ce   : > { %1855 = vlog2.f32 %v2495_v49 }
 0x3cf   : > { %v2497_v28 = vpop.xlane.xlu1 %1340  ;;  %1857 = vrcp.f32 %v2495_v49 }
 0x3d0   : > { %v2499_v57 = vpop.xlane.xlu0 %1338 }
 0x3d3   : > { %v2501_v0 = vpop.xlane.xlu1 %974 }
 0x3d4   : > { %v2503_v9 = vpop.xlane.xlu0 %972  ;;  %1859 = vrcp.f32 %v2501_v0 }
 0x3d5   : > { %1861 = vlog2.f32 %v2501_v0  ;;  %v1227_v0 = vcvt.f32.s32 %v2437_v11 }
 0x3d6   : > { %1863 = vlog2.f32 %v2503_v9 }
 0x3d7   : > { %v2506_v50 = vpop.xlane.xlu1 %1344 }
 0x3d8   : > { %v2511_v51 = vpop.xlane.xlu0 %1342 }
 0x3db   : > { %v2513_v38 = vpop.xlane.xlu1 %978 }
 0x3dc   : > { %v2518_v44 = vpop.xlane.xlu0 %976 }
 0x40b   : > { %v1085_v7 = vpop.xlane.xlu1 %1084 }
 0x40c   : > { %v1086_v52 = vcvt.f32.s32 %v1085_v7  ;;  %v1102_v7 = vshll.u32 %v1101_v61, 16  ;;  %v1369_v61 = vsub.f32 %v1003_v21, %v1353_v20  ;;  %v1355_v20 = vmul.f32 %v1832_v1, %v2481_v47 }
 0x40d   : > { %v1199_v1 = vcvt.f32.s32 %v2419_v33 }
 0x40e   : > { %v1089_v48 = vadd.s32 %v1088_v8, %v1086_v52  ;;  %v1286_v52 = vsub.f32 0.0, %v2447_v18 }
 0x40f   : > { %v1113_v58 = vpop.xlane.xlu1 %1112  ;;  %v1071_v53 = vpop.xlane.xlu0 %1070 }
 0x410   : > { %v1399_v39 = vcvt.s32.f32 %v1089_v48  ;;  %v1114_v10 = vcvt.f32.s32 %v1113_v58  ;;  %v1072_v19 = vcvt.f32.s32 %v1071_v53  ;;  %v1289_v48 = vsub.f32 0.0, %v1003_v21 }
 0x411   : > { %v1157_v58 = vcvt.f32.s32 %v2411_v31  ;;  %v1005_v53 = vmul.f32 0.6931472, %v1830_v22  ;;  %v1368_v21 = vsub.f32 %v1001_v14, %v1352_v43 }
 0x412   : > { %1416 = vst.msk [vmem:[%s2343_s22 + $0x8] sm:$0xff] %vm1414_vm2, %v1399_v39  ;;  %v1117_v27 = vadd.s32 %v1116_v42, %v1114_v10  ;;  %v1075_v32 = vadd.s32 %v1074_v30, %v1072_v19  ;;  %v1144_v42 = vshll.u32 %v1143_v13, 16  ;;  %v1130_v30 = vshll.u32 %v1129_v62, 16  ;;  %v1834_v10 = vpop.eup %1833 }
 0x413   : > { %1433 = vst.msk [vmem:[%s2343_s22 + $0x8] sm:$0xff] %vm1431_vm0, %v1287_v17  ;;  %v1099_v4 = vpop.xlane.xlu0 %1098  ;;  %v1836_v13 = vpop.eup %1835  ;;  %v1288_v17 = vsub.f32 0.0, %v1001_v14  ;;  %v1354_v23 = vmul.f32 %v1834_v10, %v2479_v36  ;;  %1865 = vrcp.f32 %v2503_v9 }
 0x414   : > { %1450 = vst.msk [vmem:[%s2343_s22 + $0x8] sm:$0xff] %vm1448_vm3, %v1367_v15  ;;  %v1401_v3 = vcvt.s32.f32 %v1117_v27  ;;  %v1398_v40 = vcvt.s32.f32 %v1075_v32  ;;  %v1100_v8 = vcvt.f32.s32 %v1099_v4  ;;  %v1172_v15 = vshll.u32 %v1171_v60, 16  ;;  %v1838_v62 = vpop.eup %1837 }
 0x415   : > { %v1290_v27 = vsub.f32 0.0, %v1005_v53  ;;  %v1291_v32 = vsub.f32 0.0, %v1007_v63  ;;  %v1840_v60 = vpop.eup %1839  ;;  %1867 = vlog2.f32 %v2513_v38 }
 0x416   : > { %1418 = vst.msk [vmem:[%s2343_s22 + $0x18] sm:$0xff] %vm1414_vm2, %v1401_v3  ;;  %1415 = vst.msk [vmem:[%s2343_s22] sm:$0xff] %vm1414_vm2, %v1398_v40  ;;  %v1103_v29 = vadd.s32 %v1102_v7, %v1100_v8  ;;  %v1842_v26 = vpop.eup %1841  ;;  %v1370_v7 = vsub.f32 %v1005_v53, %v1354_v23  ;;  %v1009_v3 = vmul.f32 0.6931472, %v1838_v62  ;;  %v1356_v40 = vmul.f32 %v1840_v60, %v2483_v45 }
 0x417   : > { %1435 = vst.msk [vmem:[%s2343_s22 + $0x18] sm:$0xff] %vm1431_vm0, %v1289_v48  ;;  %1432 = vst.msk [vmem:[%s2343_s22] sm:$0xff] %vm1431_vm0, %v1286_v52  ;;  %v1141_v24 = vpop.xlane.xlu1 %1140  ;;  %v1127_v39 = vpop.xlane.xlu0 %1126  ;;  %v1011_v8 = vmul.f32 0.6931472, %v1836_v13  ;;  %v1371_v52 = vsub.f32 %v1007_v63, %v1355_v20  ;;  %v1357_v14 = vmul.f32 %v1842_v26, %v2485_v5  ;;  %v1200_v63 = vshll.u32 %v1199_v1, 16 }
 0x418   : > { %1452 = vst.msk [vmem:[%s2343_s22 + $0x18] sm:$0xff] %vm1448_vm3, %v1369_v61  ;;  %1449 = vst.msk [vmem:[%s2343_s22] sm:$0xff] %vm1448_vm3, %v1366_v55  ;;  %v1400_v31 = vcvt.s32.f32 %v1103_v29  ;;  %v1142_v19 = vcvt.f32.s32 %v1141_v24  ;;  %v1128_v16 = vcvt.f32.s32 %v1127_v39  ;;  %v1158_v55 = vshll.u32 %v1157_v58, 16  ;;  %v1844_v59 = vpop.eup %1843 }
 0x419   : > { %v1372_v61 = vsub.f32 %v1009_v3, %v1356_v40  ;;  %v1373_v29 = vsub.f32 %v1011_v8, %v1357_v14  ;;  %v1846_v58 = vpop.eup %1845  ;;  %1869 = vlog2.f32 %v2518_v44  ;;  %v1255_v26 = vcvt.f32.s32 %v2455_v2 }
 0x41a   : > { %1417 = vst.msk [vmem:[%s2343_s22 + $0x10] sm:$0xff] %vm1414_vm2, %v1400_v31  ;;  %v1145_v56 = vadd.s32 %v1144_v42, %v1142_v19  ;;  %v1131_v18 = vadd.s32 %v1130_v30, %v1128_v16  ;;  %v1292_v42 = vsub.f32 0.0, %v1009_v3  ;;  %v1293_v30 = vsub.f32 0.0, %v1011_v8  ;;  %v1848_v53 = vpop.eup %1847 }
 0x41b   : > { %1434 = vst.msk [vmem:[%s2343_s22 + $0x10] sm:$0xff] %vm1431_vm0, %v1288_v17  ;;  %v1169_v36 = vpop.xlane.xlu1 %1168  ;;  %v1155_v25 = vpop.xlane.xlu0 %1154  ;;  %v1015_v19 = vmul.f32 0.6931472, %v1844_v59  ;;  %v1013_v16 = vmul.f32 0.6931472, %v1846_v58  ;;  %v1358_v13 = vmul.f32 %v1848_v53, %v2491_v54  ;;  %v1241_v40 = vcvt.f32.s32 %v2457_v6 }
 0x41c   : > { %1451 = vst.msk [vmem:[%s2343_s22 + $0x10] sm:$0xff] %vm1448_vm3, %v1368_v21  ;;  %v1403_v47 = vcvt.s32.f32 %v1145_v56  ;;  %v1402_v35 = vcvt.s32.f32 %v1131_v18  ;;  %v1170_v4 = vcvt.f32.s32 %v1169_v36  ;;  %v1156_v22 = vcvt.f32.s32 %v1155_v25  ;;  %v1850_v39 = vpop.eup %1849 }
 0x41d   : > { %v1359_v49 = vmul.f32 %v1850_v39, %v2489_v41  ;;  %v1295_v20 = vsub.f32 0.0, %v1015_v19  ;;  %v1294_v41 = vsub.f32 0.0, %v1013_v16  ;;  %v1852_v56 = vpop.eup %1851  ;;  %v1213_v18 = vcvt.f32.s32 %v2439_v34 }
 0x41e   : > { %1420 = vst.msk [vmem:[%s2343_s22 + $0x28] sm:$0xff] %vm1414_vm2, %v1403_v47  ;;  %1419 = vst.msk [vmem:[%s2343_s22 + $0x20] sm:$0xff] %vm1414_vm2, %v1402_v35  ;;  %v1173_v43 = vadd.s32 %v1172_v15, %v1170_v4  ;;  %v1159_v48 = vadd.s32 %v1158_v55, %v1156_v22  ;;  %v1185_v15 = vcvt.f32.s32 %v2421_v46  ;;  %v1854_v54 = vpop.eup %1853  ;;  %v1019_v25 = vmul.f32 0.6931472, %v1852_v56 }
 0x41f   : > { %1437 = vst.msk [vmem:[%s2343_s22 + $0x28] sm:$0xff] %vm1431_vm0, %v1291_v32  ;;  %1436 = vst.msk [vmem:[%s2343_s22 + $0x20] sm:$0xff] %vm1431_vm0, %v1290_v27  ;;  %v1375_v55 = vsub.f32 %v1015_v19, %v1359_v49  ;;  %v1374_v27 = vsub.f32 %v1013_v16, %v1358_v13  ;;  %v1856_v9 = vpop.eup %1855  ;;  %v1228_v32 = vshll.u32 %v1227_v0, 16  ;;  %v1214_v47 = vshll.u32 %v1213_v18, 16 }
 0x420   : > { %1454 = vst.msk [vmem:[%s2343_s22 + $0x28] sm:$0xff] %vm1448_vm3, %v1371_v52  ;;  %1453 = vst.msk [vmem:[%s2343_s22 + $0x20] sm:$0xff] %vm1448_vm3, %v1370_v7  ;;  %v1405_v45 = vcvt.s32.f32 %v1173_v43  ;;  %v1404_v5 = vcvt.s32.f32 %v1159_v48  ;;  %v1186_v10 = vshll.u32 %v1185_v15, 16  ;;  %v1858_v36 = vpop.eup %1857  ;;  %v1361_v35 = vmul.f32 %v1854_v54, %v2497_v28 }
 0x421   : > { %v1017_v7 = vmul.f32 0.6931472, %v1856_v9  ;;  %v1860_v3 = vpop.eup %1859  ;;  %v1360_v8 = vmul.f32 %v1858_v36, %v2499_v57  ;;  %v1297_v48 = vsub.f32 0.0, %v1019_v25  ;;  %1871 = vrcp.f32 %v2513_v38 }
 0x422   : > { %1422 = vst.msk [vmem:[%s2343_s22 + $0x38] sm:$0xff] %vm1414_vm2, %v1405_v45  ;;  %1421 = vst.msk [vmem:[%s2343_s22 + $0x30] sm:$0xff] %vm1414_vm2, %v1404_v5  ;;  %v1862_v43 = vpop.eup %1861  ;;  %v1377_v45 = vsub.f32 %v1019_v25, %v1361_v35  ;;  %1873 = vrcp.f32 %v2518_v44  ;;  %v1256_v6 = vshll.u32 %v1255_v26, 16  ;;  %v1363_v59 = vmul.f32 %v1860_v3, %v2506_v50 }
 0x423   : > { %1439 = vst.msk [vmem:[%s2343_s22 + $0x38] sm:$0xff] %vm1431_vm0, %v1293_v30  ;;  %1438 = vst.msk [vmem:[%s2343_s22 + $0x30] sm:$0xff] %vm1431_vm0, %v1292_v42  ;;  %v1864_v28 = vpop.eup %1863  ;;  %v1296_v57 = vsub.f32 0.0, %v1017_v7  ;;  %v1023_v1 = vmul.f32 0.6931472, %v1862_v43 }
 0x424   : > { %1456 = vst.msk [vmem:[%s2343_s22 + $0x38] sm:$0xff] %vm1448_vm3, %v1373_v29  ;;  %1455 = vst.msk [vmem:[%s2343_s22 + $0x30] sm:$0xff] %vm1448_vm3, %v1372_v61  ;;  %v1866_v5 = vpop.eup %1865  ;;  %v1242_v61 = vshll.u32 %v1241_v40, 16  ;;  %v1376_v29 = vsub.f32 %v1017_v7, %v1360_v8  ;;  %v1021_v15 = vmul.f32 0.6931472, %v1864_v28 }
 0x425   : > { %v1362_v58 = vmul.f32 %v1866_v5, %v2511_v51  ;;  %v1379_v49 = vsub.f32 %v1023_v1, %v1363_v59 }
 0x426   : > { %v1298_v50 = vsub.f32 0.0, %v1021_v15 }
 0x427   : > { %v1197_v33 = vpop.xlane.xlu1 %1196  ;;  %v1183_v24 = vpop.xlane.xlu0 %1182  ;;  %v1378_v51 = vsub.f32 %v1021_v15, %v1362_v58 }
 0x428   : > { %v1198_v31 = vcvt.f32.s32 %v1197_v33  ;;  %v1184_v46 = vcvt.f32.s32 %v1183_v24  ;;  %v1283_v33 = vcvt.f32.s32 %v2465_v12  ;;  %v1269_v24 = vcvt.f32.s32 %v2467_v37 }
 0x42a   : > { %v1201_v17 = vadd.s32 %v1200_v63, %v1198_v31  ;;  %v1187_v21 = vadd.s32 %v1186_v10, %v1184_v46  ;;  %v1868_v31 = vpop.eup %1867  ;;  %v1299_v46 = vsub.f32 0.0, %v1023_v1  ;;  %v1284_v16 = vshll.u32 %v1283_v33, 16 }
 0x42b   : > { %v1870_v19 = vpop.eup %1869  ;;  %v1270_v13 = vshll.u32 %v1269_v24, 16  ;;  %v1027_v0 = vmul.f32 0.6931472, %v1868_v31 }
 0x42c   : > { %v1407_v23 = vcvt.s32.f32 %v1201_v17  ;;  %v1406_v62 = vcvt.s32.f32 %v1187_v21 }
 0x42e   : > { %1424 = vst.msk [vmem:[%s2343_s22 + $0x48] sm:$0xff] %vm1414_vm2, %v1407_v23  ;;  %1423 = vst.msk [vmem:[%s2343_s22 + $0x40] sm:$0xff] %vm1414_vm2, %v1406_v62  ;;  %v1025_v23 = vmul.f32 0.6931472, %v1870_v19  ;;  %v1872_v62 = vpop.eup %1871 }
 0x42f   : > { %1441 = vst.msk [vmem:[%s2343_s22 + $0x48] sm:$0xff] %vm1431_vm0, %v1295_v20  ;;  %1440 = vst.msk [vmem:[%s2343_s22 + $0x40] sm:$0xff] %vm1431_vm0, %v1294_v41  ;;  %v1225_v11 = vpop.xlane.xlu1 %1224  ;;  %v1874_v56 = vpop.eup %1873 }
 0x430   : > { %1458 = vst.msk [vmem:[%s2343_s22 + $0x48] sm:$0xff] %vm1448_vm3, %v1375_v55  ;;  %1457 = vst.msk [vmem:[%s2343_s22 + $0x40] sm:$0xff] %vm1448_vm3, %v1374_v27  ;;  %v1226_v34 = vcvt.f32.s32 %v1225_v11  ;;  %v1211_v60 = vpop.xlane.xlu0 %1210 }
 0x431   : > { %v1212_v22 = vcvt.f32.s32 %v1211_v60 }
 0x432   : > { %v1229_v4 = vadd.s32 %v1228_v32, %v1226_v34  ;;  %v1301_v32 = vsub.f32 0.0, %v1027_v0  ;;  %v1300_v34 = vsub.f32 0.0, %v1025_v23 }
 0x433   : > { %v1215_v14 = vadd.s32 %v1214_v47, %v1212_v22 }
 0x434   : > { %v1409_v52 = vcvt.s32.f32 %v1229_v4 }
 0x435   : > { %v1408_v2 = vcvt.s32.f32 %v1215_v14 }
 0x436   : > { %1426 = vst.msk [vmem:[%s2343_s22 + $0x58] sm:$0xff] %vm1414_vm2, %v1409_v52 }
 0x437   : > { %1443 = vst.msk [vmem:[%s2343_s22 + $0x58] sm:$0xff] %vm1431_vm0, %v1297_v48  ;;  %v1253_v42 = vpop.xlane.xlu1 %1252 }
 0x438   : > { %v1239_v30 = vpop.xlane.xlu0 %1238  ;;  %1460 = vst.msk [vmem:[%s2343_s22 + $0x58] sm:$0xff] %vm1448_vm3, %v1377_v45  ;;  %v1254_v38 = vcvt.f32.s32 %v1253_v42 }
 0x439   : > { %1425 = vst.msk [vmem:[%s2343_s22 + $0x50] sm:$0xff] %vm1414_vm2, %v1408_v2  ;;  %v1240_v44 = vcvt.f32.s32 %v1239_v30 }
 0x43a   : > { %1442 = vst.msk [vmem:[%s2343_s22 + $0x50] sm:$0xff] %vm1431_vm0, %v1296_v57  ;;  %v1257_v53 = vadd.s32 %v1256_v6, %v1254_v38 }
 0x43b   : > { %1459 = vst.msk [vmem:[%s2343_s22 + $0x50] sm:$0xff] %vm1448_vm3, %v1376_v29  ;;  %v1243_v63 = vadd.s32 %v1242_v61, %v1240_v44 }
 0x43c   : > { %v1411_v39 = vcvt.s32.f32 %v1257_v53 }
 0x43d   : > { %v1410_v10 = vcvt.s32.f32 %v1243_v63 }
 0x43e   : > { %1428 = vst.msk [vmem:[%s2343_s22 + $0x68] sm:$0xff] %vm1414_vm2, %v1411_v39 }
 0x43f   : > { %1427 = vst.msk [vmem:[%s2343_s22 + $0x60] sm:$0xff] %vm1414_vm2, %v1410_v10  ;;  %v1281_v12 = vpop.xlane.xlu1 %1280 }
 0x440   : > { %1445 = vst.msk [vmem:[%s2343_s22 + $0x68] sm:$0xff] %vm1431_vm0, %v1299_v46  ;;  %1444 = vst.msk [vmem:[%s2343_s22 + $0x60] sm:$0xff] %vm1431_vm0, %v1298_v50  ;;  %v1267_v37 = vpop.xlane.xlu0 %1266  ;;  %v1282_v17 = vcvt.f32.s32 %v1281_v12 }
 0x441   : > { %1462 = vst.msk [vmem:[%s2343_s22 + $0x68] sm:$0xff] %vm1448_vm3, %v1379_v49  ;;  %1461 = vst.msk [vmem:[%s2343_s22 + $0x60] sm:$0xff] %vm1448_vm3, %v1378_v51  ;;  %v1268_v21 = vcvt.f32.s32 %v1267_v37 }
 0x442   : > { %v1285_v20 = vadd.s32 %v1284_v16, %v1282_v17 }
 0x443   : > { %v1271_v41 = vadd.s32 %v1270_v13, %v1268_v21  ;;  %v1349_v18 = vpop.xlane.xlu1 %1348 }
 0x444   : > { %v1347_v55 = vpop.xlane.xlu0 %1346  ;;  %v1413_v27 = vcvt.s32.f32 %v1285_v20  ;;  %v1365_v11 = vmul.f32 %v1872_v62, %v1349_v18 }
 0x445   : > { %v1412_v54 = vcvt.s32.f32 %v1271_v41  ;;  %v1364_v9 = vmul.f32 %v1874_v56, %v1347_v55 }
 0x446   : > { %1430 = vst.msk [vmem:[%s2343_s22 + $0x78] sm:$0xff] %vm1414_vm2, %v1413_v27  ;;  %v1381_v36 = vsub.f32 %v1027_v0, %v1365_v11 }
 0x447   : > { %1429 = vst.msk [vmem:[%s2343_s22 + $0x70] sm:$0xff] %vm1414_vm2, %v1412_v54  ;;  %v1380_v25 = vsub.f32 %v1025_v23, %v1364_v9 }
 0x448   : > { %1447 = vst.msk [vmem:[%s2343_s22 + $0x78] sm:$0xff] %vm1431_vm0, %v1301_v32  ;;  %1446 = vst.msk [vmem:[%s2343_s22 + $0x70] sm:$0xff] %vm1431_vm0, %v1300_v34 }
 0x449   : > { %1464 = vst.msk [vmem:[%s2343_s22 + $0x78] sm:$0xff] %vm1448_vm3, %v1381_v36  ;;  %1463 = vst.msk [vmem:[%s2343_s22 + $0x70] sm:$0xff] %vm1448_vm3, %v1380_v25 }
 0x44a PF: > { %s17_s24 = sadd.s32 1, %s1881_s24  }
 0x44b   : > { %p14_p4 = scmp.ge.s32.totalorder %s17_s24, 4  }
 0x44d   :  { %16 = sbr.rel (!%p14_p4) target bundleno = 1 (0x1), region = 78 }

</bundles_post_ra>
